<compile_context>
chip_gen: v5e
topology: v5e:2x2
jax: 0.10.0
libtpu: 0.0.40
codegen_flags: <defaults>
</compile_context>

<pallas_src>
import functools

import jax
import jax.numpy as jnp
from jax import lax
from jax.experimental import pallas as pl
from jax.experimental.pallas import tpu as pltpu


def _layer_norm(x, gamma, beta, eps=1e-5):
    mu = jnp.mean(x, axis=-1, keepdims=True)
    xc = x - mu
    var = jnp.mean(xc * xc, axis=-1, keepdims=True)
    return xc * lax.rsqrt(var + eps) * gamma + beta


def sym_gated_gcn_kernel(h_ref, e_hbm, S_ref, Dm_ref, ST_ref, DmT_ref,
                         Wcat_ref, bcat_ref, WB3_ref, bB3_ref, ln_ref,
                         h_out_ref, e_out_hbm,
                         h_state, e_state, A1_scr, GA_scr, GB_scr, accf, accb,
                         dma_sem, *, D, TE):
    """Grid = (layer, edge_tile).  Scratch carries h/e/accumulators across steps."""
    f32 = jnp.float32
    l = pl.program_id(0)
    k = pl.program_id(1)
    L = pl.num_programs(0)
    K = pl.num_programs(1)
    off = pl.multiple_of(k * TE, TE)

    # ---- one-time load: node features + full padded edge features into VMEM.
    @pl.when((l == 0) & (k == 0))
    def _():
        h_state[...] = h_ref[...].astype(f32)
        cp = pltpu.make_async_copy(e_hbm, e_state, dma_sem)
        cp.start()
        cp.wait()

    # ---- per-layer node precompute (fused 5-way linear) + accumulator init.
    @pl.when(k == 0)
    def _():
        # Wcat columns ordered [A1 | B1 | A2 | B2 | A3]
        HL = (jnp.dot(h_state[...], Wcat_ref[...], preferred_element_type=f32)
              + bcat_ref[...])
        A1_scr[...] = HL[:, 0:D]
        GA_scr[...] = HL[:, D:3 * D].astype(GA_scr.dtype)      # [B1h | A2h] bf16
        GB_scr[...] = HL[:, 3 * D:5 * D].astype(GB_scr.dtype)  # [B2h | A3h] bf16
        accf[...] = jnp.zeros_like(accf)
        accb[...] = jnp.zeros_like(accb)

    # ---- edge tile update ---------------------------------------------------
    e_cur = e_state[pl.ds(off, TE), :]                                   # [TE, D]
    B3e = jnp.dot(e_cur, WB3_ref[...], preferred_element_type=f32) + bB3_ref[...]

    # gathers as bf16 MXU matmuls (S/Dm exact 0/1 => exact row selection of bf16
    # node features; accumulation in f32).
    gS = jnp.dot(S_ref[...], GA_scr[...], preferred_element_type=f32)   # [B1h_u|A2h_u]
    gD = jnp.dot(Dm_ref[...], GB_scr[...], preferred_element_type=f32)  # [B2h_v|A3h_v]

    e_pre = gS[:, 0:D] + gD[:, 0:D] + B3e
    e_act = jnp.maximum(_layer_norm(e_pre, ln_ref[2], ln_ref[3]), 0.0)
    e_new = e_act + e_cur                                      # residual
    sigma = jax.nn.sigmoid(e_new)

    # fused scatter-adds: numerator and denominator share one MXU pass each.
    msg_f = jnp.concatenate([gS[:, D:2 * D] * sigma, sigma], axis=-1)   # [TE, 2D]
    msg_b = jnp.concatenate([gD[:, D:2 * D] * sigma, sigma], axis=-1)
    accf[...] += jnp.dot(DmT_ref[...], msg_f.astype(jnp.bfloat16),
                         preferred_element_type=f32)
    accb[...] += jnp.dot(ST_ref[...], msg_b.astype(jnp.bfloat16),
                         preferred_element_type=f32)

    # persist e for the next layer.
    e_state[pl.ds(off, TE), :] = e_new

    # ---- per-layer node finalize (after the last edge tile) -----------------
    @pl.when(k == K - 1)
    def _():
        af = accf[...]
        ab = accb[...]
        h_fwd = af[:, 0:D] * pl.reciprocal(af[:, D:2 * D] + 1e-6, approx=True)
        h_bwd = ab[:, 0:D] * pl.reciprocal(ab[:, D:2 * D] + 1e-6, approx=True)
        h_pre = A1_scr[...] + h_fwd + h_bwd
        h_act = jnp.maximum(_layer_norm(h_pre, ln_ref[0], ln_ref[1]), 0.0)
        h_new = h_act + h_state[...]                            # residual
        # dropout: eval-mode identity (F.dropout(training=False))
        h_state[...] = h_new
        h_out_ref[...] = h_new.astype(h_out_ref.dtype)

    # ---- one-time writeback of the final e (single DMA, no per-layer traffic).
    @pl.when((l == L - 1) & (k == K - 1))
    def _():
        cp = pltpu.make_async_copy(e_state, e_out_hbm, dma_sem)
        cp.start()
        cp.wait()


def _vmem_limit_bytes(N, D, TE, E_pad):
    f32b, bf16b = 4, 2
    scratch = (f32b * (2 * N * D + E_pad * D + 2 * N * 2 * D)
               + bf16b * (2 * N * 2 * D))
    per_layer_w = f32b * (D * 5 * D + 5 * D + D * D + D + 4 * D)
    blocks = f32b * (2 * N * D) + bf16b * (4 * TE * N)
    est = scratch + 2 * (per_layer_w + blocks)          # double-buffered in/out
    return int(min(max(2 * est + (4 << 20), 16 << 20), 64 << 20))


@functools.partial(jax.jit, static_argnames=("edge_tile",))
def _run_processor(h, e, S, Dm, ST, DmT, Wcat, bcat, WB3, bB3, ln, *, edge_tile):
    N, D = h.shape
    E_pad = e.shape[0]
    TE = edge_tile
    K = E_pad // TE
    L = Wcat.shape[0]

    kernel = functools.partial(sym_gated_gcn_kernel, D=D, TE=TE)
    grid_spec = pltpu.PrefetchScalarGridSpec(
        num_scalar_prefetch=0,
        grid=(L, K),
        in_specs=[
            pl.BlockSpec((N, D), lambda l, k: (0, 0)),               # h (resident)
            pl.BlockSpec(memory_space=pl.ANY),                       # e (full, HBM)
            pl.BlockSpec((TE, N), lambda l, k: (k, 0)),              # S  (bf16)
            pl.BlockSpec((TE, N), lambda l, k: (k, 0)),              # Dm (bf16)
            pl.BlockSpec((N, TE), lambda l, k: (0, k)),              # S^T
            pl.BlockSpec((N, TE), lambda l, k: (0, k)),              # Dm^T
            pl.BlockSpec((None, D, 5 * D), lambda l, k: (l, 0, 0)),  # Wcat[l]
            pl.BlockSpec((None, 1, 5 * D), lambda l, k: (l, 0, 0)),  # bcat[l]
            pl.BlockSpec((None, D, D), lambda l, k: (l, 0, 0)),      # WB3[l]
            pl.BlockSpec((None, 1, D), lambda l, k: (l, 0, 0)),      # bB3[l]
            pl.BlockSpec((None, 4, 1, D), lambda l, k: (l, 0, 0, 0)),  # ln[l]
        ],
        out_specs=(
            pl.BlockSpec((N, D), lambda l, k: (0, 0)),               # h_out
            pl.BlockSpec(memory_space=pl.ANY),                       # e_out (HBM)
        ),
        scratch_shapes=[
            pltpu.VMEM((N, D), jnp.float32),        # h_state (carried over layers)
            pltpu.VMEM((E_pad, D), jnp.float32),    # e_state (carried over layers)
            pltpu.VMEM((N, D), jnp.float32),        # A1h
            pltpu.VMEM((N, 2 * D), jnp.bfloat16),   # [B1h | A2h]
            pltpu.VMEM((N, 2 * D), jnp.bfloat16),   # [B2h | A3h]
            pltpu.VMEM((N, 2 * D), jnp.float32),    # forward  [num | den]
            pltpu.VMEM((N, 2 * D), jnp.float32),    # backward [num | den]
            pltpu.SemaphoreType.DMA(()),            # e in/out DMA
        ],
    )
    # Both axes are sequential: layers carry h/e state, edge tiles carry the
    # accumulators.
    # TODO(synk): cross-core edge parallelism (v7x 2-TC) needs a cross-core
    # reduction of the accumulators; kept "arbitrary" for correctness.
    return pl.pallas_call(
        kernel,
        out_shape=(jax.ShapeDtypeStruct((N, D), h.dtype),
                   jax.ShapeDtypeStruct((E_pad, D), jnp.float32)),
        grid_spec=grid_spec,
        compiler_params=pltpu.CompilerParams(
            dimension_semantics=("arbitrary", "arbitrary"),
            vmem_limit_bytes=_vmem_limit_bytes(N, D, TE, E_pad)),
    )(h, e, S, Dm, ST, DmT, Wcat, bcat, WB3, bB3, ln)


def _stack_params(params):
    """Stack per-layer params; fuse the 5 node linears column-wise as [A1|B1|A2|B2|A3]."""
    order = (0, 3, 1, 4, 2)  # Wn/bn index order is (A1, A2, A3, B1, B2)
    Wc, bc, W3, b3, lns = [], [], [], [], []
    for (Wn, bn, WB3, bB3, ln) in params:
        Wc.append(jnp.concatenate([Wn[i] for i in order], axis=-1))   # [D, 5D]
        bc.append(jnp.concatenate([bn[i] for i in order], axis=-1))   # [1, 5D]
        W3.append(WB3)
        b3.append(bB3)
        lns.append(ln)
    return (jnp.stack(Wc), jnp.stack(bc), jnp.stack(W3), jnp.stack(b3),
            jnp.stack(lns))


def sym_gated_gcn_processor(h, e, src, dst, params, edge_tile=256):
    """Apply num_layers SymGatedGCN layers in one fused pallas_call."""
    # TODO(synk): for very large sparse graphs, replace the dense one-hot
    # incidence matmuls with an SMEM-prefetched src/dst gather + segment-sum.
    N, D = h.shape
    E = e.shape[0]
    TE = E if E <= edge_tile else edge_tile          # tiled TE is a multiple of 128
    E_pad = ((E + TE - 1) // TE) * TE

    S = jax.nn.one_hot(src, N, dtype=jnp.bfloat16)   # [E, N] exact 0/1
    Dm = jax.nn.one_hot(dst, N, dtype=jnp.bfloat16)
    e_in = e.astype(jnp.float32)
    if E_pad != E:
        pad = ((0, E_pad - E), (0, 0))
        S = jnp.pad(S, pad)
        Dm = jnp.pad(Dm, pad)
        e_in = jnp.pad(e_in, pad)
    ST, DmT = S.T, Dm.T                              # pre-transposed (wrapper glue)

    Wcat, bcat, WB3, bB3, ln = _stack_params(params)
    h_out, e_out = _run_processor(h, e_in, S, Dm, ST, DmT,
                                  Wcat, bcat, WB3, bB3, ln, edge_tile=TE)
    return h_out, e_out[:E].astype(e.dtype)


def init_params(key, num_layers, hidden):
    """Deterministic Linear-style init (uniform +-1/sqrt(D)); LayerNorm gamma=1, beta=0."""
    params = []
    scale = 1.0 / float(hidden) ** 0.5
    for _ in range(num_layers):
        key, k0, k1, k2, k3 = jax.random.split(key, 5)
        Wn = jax.random.uniform(k0, (5, hidden, hidden), jnp.float32, -scale, scale)
        bn = jax.random.uniform(k1, (5, 1, hidden), jnp.float32, -scale, scale)
        WB3 = jax.random.uniform(k2, (hidden, hidden), jnp.float32, -scale, scale)
        bB3 = jax.random.uniform(k3, (1, hidden), jnp.float32, -scale, scale)
        ln = jnp.stack([jnp.ones((1, hidden), jnp.float32),    # gamma_h
                        jnp.zeros((1, hidden), jnp.float32),   # beta_h
                        jnp.ones((1, hidden), jnp.float32),    # gamma_e
                        jnp.zeros((1, hidden), jnp.float32)])  # beta_e -> [4,1,D]
        params.append((Wn, bn, WB3, bB3, ln))
    return params


def _reference(h, e, src, dst, params):
    """Pure-JAX reference of the PyTorch forward (LayerNorm branch, eval mode)."""
    def LN(x, g, b, eps=1e-5):
        mu = x.mean(-1, keepdims=True)
        v = ((x - mu) ** 2).mean(-1, keepdims=True)
        return (x - mu) / jnp.sqrt(v + eps) * g + b

    for (Wn, bn, WB3, bB3, ln) in params:
        A1h = h @ Wn[0] + bn[0]
        A2h = h @ Wn[1] + bn[1]
        A3h = h @ Wn[2] + bn[2]
        B1h = h @ Wn[3] + bn[3]
        B2h = h @ Wn[4] + bn[4]
        B3e = e @ WB3 + bB3
        e_new = jnp.maximum(LN(B1h[src] + B2h[dst] + B3e, ln[2], ln[3]), 0.0) + e
        sigma = jax.nn.sigmoid(e_new)
        z = jnp.zeros_like(h)
        num_f = z.at[dst].add(A2h[src] * sigma)
        den_f = z.at[dst].add(sigma)
        num_b = z.at[src].add(A3h[dst] * sigma)
        den_b = z.at[src].add(sigma)
        h_pre = A1h + num_f / (den_f + 1e-6) + num_b / (den_b + 1e-6)
        h = jnp.maximum(LN(h_pre, ln[0], ln[1]), 0.0) + h
        e = e_new
    return h, e


if __name__ == "__main__":
    num_layers = 2
    hidden = 32     # hidden_features
    N = 32          # nodes
    E = 64          # edges

    key = jax.random.PRNGKey(0)
    k_h, k_e, k_src, k_dst, k_p = jax.random.split(key, 5)
    h = jax.random.normal(k_h, (N, hidden), jnp.float32)
    e = jax.random.normal(k_e, (E, hidden), jnp.float32)
    src = jax.random.randint(k_src, (E,), 0, N)
    dst = jax.random.randint(k_dst, (E,), 0, N)
    params = init_params(k_p, num_layers, hidden)

    h_out, e_out = sym_gated_gcn_processor(h, e, src, dst, params)
    h_out = jax.block_until_ready(h_out)
    e_out = jax.block_until_ready(e_out)

    h_chk, e_chk = _reference(h, e, src, dst, params)

    assert h_out.shape == (N, hidden) and e_out.shape == (E, hidden)
    assert bool(jnp.all(jnp.isfinite(h_out))) and bool(jnp.all(jnp.isfinite(e_out)))
    assert bool(jnp.allclose(h_out, h_chk, rtol=5e-2, atol=5e-2))
    assert bool(jnp.allclose(e_out, e_chk, rtol=5e-2, atol=5e-2))
    print("KERNEL_OK")
</pallas_src>

<mosaic_0001>
module attributes {stable_mosaic.version = 11 : i64} {
  func.func @sym_gated_gcn_kernel(%arg0: i32, %arg1: i32, %arg2: memref<32x32xf32, #tpu.memory_space<vmem>>, %arg3: memref<64x32xf32, #tpu.memory_space<any>>, %arg4: memref<64x32xbf16, #tpu.memory_space<vmem>>, %arg5: memref<64x32xbf16, #tpu.memory_space<vmem>>, %arg6: memref<32x64xbf16, #tpu.memory_space<vmem>>, %arg7: memref<32x64xbf16, #tpu.memory_space<vmem>>, %arg8: memref<1x32x160xf32, #tpu.memory_space<vmem>>, %arg9: memref<1x1x160xf32, #tpu.memory_space<vmem>>, %arg10: memref<1x32x32xf32, #tpu.memory_space<vmem>>, %arg11: memref<1x1x32xf32, #tpu.memory_space<vmem>>, %arg12: memref<1x4x1x32xf32, #tpu.memory_space<vmem>>, %arg13: memref<32x32xf32, #tpu.memory_space<vmem>>, %arg14: memref<64x32xf32, #tpu.memory_space<any>>, %arg15: memref<32x32xf32, #tpu.memory_space<vmem>>, %arg16: memref<64x32xf32, #tpu.memory_space<vmem>>, %arg17: memref<32x32xf32, #tpu.memory_space<vmem>>, %arg18: memref<32x64xbf16, #tpu.memory_space<vmem>>, %arg19: memref<32x64xbf16, #tpu.memory_space<vmem>>, %arg20: memref<32x64xf32, #tpu.memory_space<vmem>>, %arg21: memref<32x64xf32, #tpu.memory_space<vmem>>, %arg22: memref<!tpu.dma_semaphore, #tpu.memory_space<semaphore_mem>>) attributes {dimension_semantics = [#tpu.dimension_semantics<arbitrary>, #tpu.dimension_semantics<arbitrary>], iteration_bounds = array<i64: 2, 1>, scalar_prefetch = 0 : i64, scratch_operands = 8 : i64, tpu.core_type = #tpu.core_type<tc>, window_params = [{pipeline_mode = #tpu.pipeline_mode<synchronous>, transform_indices = @transform_0, window_bounds = array<i64: 32, 32>}, {}, {transform_indices = @transform_2, window_bounds = array<i64: 64, 32>}, {transform_indices = @transform_3, window_bounds = array<i64: 64, 32>}, {transform_indices = @transform_4, window_bounds = array<i64: 32, 64>}, {transform_indices = @transform_5, window_bounds = array<i64: 32, 64>}, {transform_indices = @transform_6, window_bounds = array<i64: 1, 32, 160>}, {transform_indices = @transform_7, window_bounds = array<i64: 1, 1, 160>}, {transform_indices = @transform_8, window_bounds = array<i64: 1, 32, 32>}, {transform_indices = @transform_9, window_bounds = array<i64: 1, 1, 32>}, {transform_indices = @transform_10, window_bounds = array<i64: 1, 4, 1, 32>}, {pipeline_mode = #tpu.pipeline_mode<synchronous>, transform_indices = @transform_11, window_bounds = array<i64: 32, 32>}, {}]} {
    %c64_i32 = arith.constant 64 : i32
    %0 = arith.muli %arg1, %c64_i32 : i32
    %1 = tpu.assume_multiple %0, 64 : i32
    %c0_i32 = arith.constant 0 : i32
    %2 = arith.cmpi eq, %arg0, %c0_i32 : i32
    %c0_i32_0 = arith.constant 0 : i32
    %3 = arith.cmpi eq, %arg1, %c0_i32_0 : i32
    %4 = arith.andi %2, %3 : i1
    %5 = arith.extui %4 : i1 to i32
    %c0_i32_1 = arith.constant 0 : i32
    %6 = arith.cmpi ne, %5, %c0_i32_1 : i32
    scf.if %6 {
      %c0_52 = arith.constant 0 : index
      %c0_53 = arith.constant 0 : index
      %89 = vector.load %arg2[%c0_52, %c0_53] : memref<32x32xf32, #tpu.memory_space<vmem>>, vector<32x32xf32>
      %c0_54 = arith.constant 0 : index
      %c0_55 = arith.constant 0 : index
      %90 = vector.load %arg15[%c0_54, %c0_55] : memref<32x32xf32, #tpu.memory_space<vmem>>, vector<32x32xf32>
      tpu.vector_store %arg15[%c0_54, %c0_55], %89 {strides = array<i32>} : memref<32x32xf32, #tpu.memory_space<vmem>>, vector<32x32xf32>,
      tpu.enqueue_dma source(%arg3 : memref<64x32xf32, #tpu.memory_space<any>>) target(%arg16 : memref<64x32xf32, #tpu.memory_space<vmem>>) target_semaphore(%arg22 : memref<!tpu.dma_semaphore, #tpu.memory_space<semaphore_mem>>)
      tpu.wait_dma2 semaphore(%arg22 : memref<!tpu.dma_semaphore, #tpu.memory_space<semaphore_mem>>) src(%arg3 : memref<64x32xf32, #tpu.memory_space<any>>) dst(%arg16 : memref<64x32xf32, #tpu.memory_space<vmem>>)
    } else {
    }
    %c0_i32_2 = arith.constant 0 : i32
    %7 = arith.cmpi eq, %arg1, %c0_i32_2 : i32
    %8 = arith.extui %7 : i1 to i32
    %c0_i32_3 = arith.constant 0 : i32
    %9 = arith.cmpi ne, %8, %c0_i32_3 : i32
    scf.if %9 {
      %c0_52 = arith.constant 0 : index
      %c0_53 = arith.constant 0 : index
      %89 = vector.load %arg15[%c0_52, %c0_53] : memref<32x32xf32, #tpu.memory_space<vmem>>, vector<32x32xf32>
      %c0_54 = arith.constant 0 : index
      %c0_55 = arith.constant 0 : index
      %c0_56 = arith.constant 0 : index
      %90 = vector.load %arg8[%c0_54, %c0_55, %c0_56] : memref<1x32x160xf32, #tpu.memory_space<vmem>>, vector<1x32x160xf32>
      %91 = vector.shape_cast %90 : vector<1x32x160xf32> to vector<32x160xf32>
      %cst_57 = arith.constant dense<0.000000e+00> : vector<32x160xf32>
      %92 = tpu.matmul %89, %91, %cst_57 {dimension_numbers = #tpu.dot_dimension_numbers<[1], [0], [0], [1], [0, 0, 1, 1], [], []>} : vector<32x32xf32>, vector<32x160xf32>, vector<32x160xf32> -> vector<32x160xf32>
      %c0_58 = arith.constant 0 : index
      %c0_59 = arith.constant 0 : index
      %c0_60 = arith.constant 0 : index
      %93 = vector.load %arg9[%c0_58, %c0_59, %c0_60] : memref<1x1x160xf32, #tpu.memory_space<vmem>>, vector<1x1x160xf32>
      %94 = vector.shape_cast %93 : vector<1x1x160xf32> to vector<1x160xf32>
      %95 = vector.broadcast %94 : vector<1x160xf32> to vector<32x160xf32>
      %96 = arith.addf %92, %95 : vector<32x160xf32>
      %97 = vector.extract_strided_slice %96 {offsets = [0, 0], sizes = [32, 32], strides = [1, 1]} : vector<32x160xf32> to vector<32x32xf32>
      %c0_61 = arith.constant 0 : index
      %c0_62 = arith.constant 0 : index
      %98 = vector.load %arg17[%c0_61, %c0_62] : memref<32x32xf32, #tpu.memory_space<vmem>>, vector<32x32xf32>
      tpu.vector_store %arg17[%c0_61, %c0_62], %97 {strides = array<i32>} : memref<32x32xf32, #tpu.memory_space<vmem>>, vector<32x32xf32>,
      %99 = vector.extract_strided_slice %96 {offsets = [0, 32], sizes = [32, 64], strides = [1, 1]} : vector<32x160xf32> to vector<32x64xf32>
      %100 = arith.truncf %99 : vector<32x64xf32> to vector<32x64xbf16>
      %c0_63 = arith.constant 0 : index
      %c0_64 = arith.constant 0 : index
      %101 = vector.load %arg18[%c0_63, %c0_64] : memref<32x64xbf16, #tpu.memory_space<vmem>>, vector<32x64xbf16>
      tpu.vector_store %arg18[%c0_63, %c0_64], %100 {strides = array<i32>} : memref<32x64xbf16, #tpu.memory_space<vmem>>, vector<32x64xbf16>,
      %102 = vector.extract_strided_slice %96 {offsets = [0, 96], sizes = [32, 64], strides = [1, 1]} : vector<32x160xf32> to vector<32x64xf32>
      %103 = arith.truncf %102 : vector<32x64xf32> to vector<32x64xbf16>
      %c0_65 = arith.constant 0 : index
      %c0_66 = arith.constant 0 : index
      %104 = vector.load %arg19[%c0_65, %c0_66] : memref<32x64xbf16, #tpu.memory_space<vmem>>, vector<32x64xbf16>
      tpu.vector_store %arg19[%c0_65, %c0_66], %103 {strides = array<i32>} : memref<32x64xbf16, #tpu.memory_space<vmem>>, vector<32x64xbf16>,
      %cst_67 = arith.constant 0.000000e+00 : f32
      %105 = vector.broadcast %cst_67 : f32 to vector<32x64xf32>
      %c0_68 = arith.constant 0 : index
      %c0_69 = arith.constant 0 : index
      %106 = vector.load %arg20[%c0_68, %c0_69] : memref<32x64xf32, #tpu.memory_space<vmem>>, vector<32x64xf32>
      tpu.vector_store %arg20[%c0_68, %c0_69], %105 {strides = array<i32>} : memref<32x64xf32, #tpu.memory_space<vmem>>, vector<32x64xf32>,
      %cst_70 = arith.constant 0.000000e+00 : f32
      %107 = vector.broadcast %cst_70 : f32 to vector<32x64xf32>
      %c0_71 = arith.constant 0 : index
      %c0_72 = arith.constant 0 : index
      %108 = vector.load %arg21[%c0_71, %c0_72] : memref<32x64xf32, #tpu.memory_space<vmem>>, vector<32x64xf32>
      tpu.vector_store %arg21[%c0_71, %c0_72], %107 {strides = array<i32>} : memref<32x64xf32, #tpu.memory_space<vmem>>, vector<32x64xf32>,
    } else {
    }
    %10 = arith.index_cast %1 : i32 to index
    %c0 = arith.constant 0 : index
    %11 = vector.load %arg16[%10, %c0] : memref<64x32xf32, #tpu.memory_space<vmem>>, vector<64x32xf32>
    %c0_4 = arith.constant 0 : index
    %c0_5 = arith.constant 0 : index
    %c0_6 = arith.constant 0 : index
    %12 = vector.load %arg10[%c0_4, %c0_5, %c0_6] : memref<1x32x32xf32, #tpu.memory_space<vmem>>, vector<1x32x32xf32>
    %13 = vector.shape_cast %12 : vector<1x32x32xf32> to vector<32x32xf32>
    %cst = arith.constant dense<0.000000e+00> : vector<64x32xf32>
    %14 = tpu.matmul %11, %13, %cst {dimension_numbers = #tpu.dot_dimension_numbers<[1], [0], [0], [1], [0, 0, 1, 1], [], []>} : vector<64x32xf32>, vector<32x32xf32>, vector<64x32xf32> -> vector<64x32xf32>
    %c0_7 = arith.constant 0 : index
    %c0_8 = arith.constant 0 : index
    %c0_9 = arith.constant 0 : index
    %15 = vector.load %arg11[%c0_7, %c0_8, %c0_9] : memref<1x1x32xf32, #tpu.memory_space<vmem>>, vector<1x1x32xf32>
    %16 = vector.shape_cast %15 : vector<1x1x32xf32> to vector<1x32xf32>
    %17 = vector.broadcast %16 : vector<1x32xf32> to vector<64x32xf32>
    %18 = arith.addf %14, %17 : vector<64x32xf32>
    %c0_10 = arith.constant 0 : index
    %c0_11 = arith.constant 0 : index
    %19 = vector.load %arg4[%c0_10, %c0_11] : memref<64x32xbf16, #tpu.memory_space<vmem>>, vector<64x32xbf16>
    %c0_12 = arith.constant 0 : index
    %c0_13 = arith.constant 0 : index
    %20 = vector.load %arg18[%c0_12, %c0_13] : memref<32x64xbf16, #tpu.memory_space<vmem>>, vector<32x64xbf16>
    %cst_14 = arith.constant dense<0.000000e+00> : vector<64x64xf32>
    %21 = tpu.matmul %19, %20, %cst_14 {dimension_numbers = #tpu.dot_dimension_numbers<[1], [0], [0], [1], [0, 0, 1, 1], [], []>} : vector<64x32xbf16>, vector<32x64xbf16>, vector<64x64xf32> -> vector<64x64xf32>
    %c0_15 = arith.constant 0 : index
    %c0_16 = arith.constant 0 : index
    %22 = vector.load %arg5[%c0_15, %c0_16] : memref<64x32xbf16, #tpu.memory_space<vmem>>, vector<64x32xbf16>
    %c0_17 = arith.constant 0 : index
    %c0_18 = arith.constant 0 : index
    %23 = vector.load %arg19[%c0_17, %c0_18] : memref<32x64xbf16, #tpu.memory_space<vmem>>, vector<32x64xbf16>
    %cst_19 = arith.constant dense<0.000000e+00> : vector<64x64xf32>
    %24 = tpu.matmul %22, %23, %cst_19 {dimension_numbers = #tpu.dot_dimension_numbers<[1], [0], [0], [1], [0, 0, 1, 1], [], []>} : vector<64x32xbf16>, vector<32x64xbf16>, vector<64x64xf32> -> vector<64x64xf32>
    %25 = vector.extract_strided_slice %21 {offsets = [0, 0], sizes = [64, 32], strides = [1, 1]} : vector<64x64xf32> to vector<64x32xf32>
    %26 = vector.extract_strided_slice %24 {offsets = [0, 0], sizes = [64, 32], strides = [1, 1]} : vector<64x64xf32> to vector<64x32xf32>
    %27 = arith.addf %25, %26 : vector<64x32xf32>
    %28 = arith.addf %27, %18 : vector<64x32xf32>
    %c0_20 = arith.constant 0 : index
    %c2 = arith.constant 2 : index
    %c0_21 = arith.constant 0 : index
    %c0_22 = arith.constant 0 : index
    %29 = vector.load %arg12[%c0_20, %c2, %c0_21, %c0_22] : memref<1x4x1x32xf32, #tpu.memory_space<vmem>>, vector<1x1x1x32xf32>
    %30 = vector.shape_cast %29 : vector<1x1x1x32xf32> to vector<1x32xf32>
    %c0_23 = arith.constant 0 : index
    %c3 = arith.constant 3 : index
    %c0_24 = arith.constant 0 : index
    %c0_25 = arith.constant 0 : index
    %31 = vector.load %arg12[%c0_23, %c3, %c0_24, %c0_25] : memref<1x4x1x32xf32, #tpu.memory_space<vmem>>, vector<1x1x1x32xf32>
    %32 = vector.shape_cast %31 : vector<1x1x1x32xf32> to vector<1x32xf32>
    %cst_26 = arith.constant dense<0.000000e+00> : vector<64xf32>
    %33 = vector.multi_reduction <add>, %28, %cst_26 [1] : vector<64x32xf32> to vector<64xf32>
    %34 = vector.shape_cast %33 : vector<64xf32> to vector<64x1xf32>
    %cst_27 = arith.constant 3.200000e+01 : f32
    %35 = vector.broadcast %cst_27 : f32 to vector<64x1xf32>
    %36 = arith.divf %34, %35 : vector<64x1xf32>
    %37 = vector.broadcast %36 : vector<64x1xf32> to vector<64x32xf32>
    %38 = arith.subf %28, %37 : vector<64x32xf32>
    %39 = arith.mulf %38, %38 : vector<64x32xf32>
    %cst_28 = arith.constant dense<0.000000e+00> : vector<64xf32>
    %40 = vector.multi_reduction <add>, %39, %cst_28 [1] : vector<64x32xf32> to vector<64xf32>
    %41 = vector.shape_cast %40 : vector<64xf32> to vector<64x1xf32>
    %cst_29 = arith.constant 3.200000e+01 : f32
    %42 = vector.broadcast %cst_29 : f32 to vector<64x1xf32>
    %43 = arith.divf %41, %42 : vector<64x1xf32>
    %cst_30 = arith.constant 9.99999974E-6 : f32
    %44 = vector.broadcast %cst_30 : f32 to vector<64x1xf32>
    %45 = arith.addf %43, %44 : vector<64x1xf32>
    %46 = math.rsqrt %45 : vector<64x1xf32>
    %47 = vector.broadcast %46 : vector<64x1xf32> to vector<64x32xf32>
    %48 = arith.mulf %38, %47 : vector<64x32xf32>
    %49 = vector.broadcast %30 : vector<1x32xf32> to vector<64x32xf32>
    %50 = arith.mulf %48, %49 : vector<64x32xf32>
    %51 = vector.broadcast %32 : vector<1x32xf32> to vector<64x32xf32>
    %52 = arith.addf %50, %51 : vector<64x32xf32>
    %cst_31 = arith.constant 0.000000e+00 : f32
    %53 = vector.broadcast %cst_31 : f32 to vector<64x32xf32>
    %54 = arith.maximumf %52, %53 : vector<64x32xf32>
    %55 = arith.addf %54, %11 : vector<64x32xf32>
    %56 = arith.negf %55 : vector<64x32xf32>
    %57 = math.exp %56 : vector<64x32xf32>
    %cst_32 = arith.constant 1.000000e+00 : f32
    %58 = vector.broadcast %cst_32 : f32 to vector<64x32xf32>
    %59 = arith.addf %58, %57 : vector<64x32xf32>
    %60 = arith.divf %58, %59 : vector<64x32xf32>
    %61 = vector.extract_strided_slice %21 {offsets = [0, 32], sizes = [64, 32], strides = [1, 1]} : vector<64x64xf32> to vector<64x32xf32>
    %62 = arith.mulf %61, %60 : vector<64x32xf32>
    %63 = tpu.concatenate %62, %60 in 1 : vector<64x32xf32>, vector<64x32xf32> -> vector<64x64xf32>
    %64 = vector.extract_strided_slice %24 {offsets = [0, 32], sizes = [64, 32], strides = [1, 1]} : vector<64x64xf32> to vector<64x32xf32>
    %65 = arith.mulf %64, %60 : vector<64x32xf32>
    %66 = tpu.concatenate %65, %60 in 1 : vector<64x32xf32>, vector<64x32xf32> -> vector<64x64xf32>
    %c0_33 = arith.constant 0 : index
    %c0_34 = arith.constant 0 : index
    %67 = vector.load %arg20[%c0_33, %c0_34] : memref<32x64xf32, #tpu.memory_space<vmem>>, vector<32x64xf32>
    %c0_35 = arith.constant 0 : index
    %c0_36 = arith.constant 0 : index
    %68 = vector.load %arg7[%c0_35, %c0_36] : memref<32x64xbf16, #tpu.memory_space<vmem>>, vector<32x64xbf16>
    %69 = arith.truncf %63 : vector<64x64xf32> to vector<64x64xbf16>
    %cst_37 = arith.constant dense<0.000000e+00> : vector<32x64xf32>
    %70 = tpu.matmul %68, %69, %cst_37 {dimension_numbers = #tpu.dot_dimension_numbers<[1], [0], [0], [1], [0, 0, 1, 1], [], []>} : vector<32x64xbf16>, vector<64x64xbf16>, vector<32x64xf32> -> vector<32x64xf32>
    %71 = arith.addf %67, %70 : vector<32x64xf32>
    %c0_38 = arith.constant 0 : index
    %c0_39 = arith.constant 0 : index
    %72 = vector.load %arg20[%c0_38, %c0_39] : memref<32x64xf32, #tpu.memory_space<vmem>>, vector<32x64xf32>
    tpu.vector_store %arg20[%c0_38, %c0_39], %71 {strides = array<i32>} : memref<32x64xf32, #tpu.memory_space<vmem>>, vector<32x64xf32>,
    %c0_40 = arith.constant 0 : index
    %c0_41 = arith.constant 0 : index
    %73 = vector.load %arg21[%c0_40, %c0_41] : memref<32x64xf32, #tpu.memory_space<vmem>>, vector<32x64xf32>
    %c0_42 = arith.constant 0 : index
    %c0_43 = arith.constant 0 : index
    %74 = vector.load %arg6[%c0_42, %c0_43] : memref<32x64xbf16, #tpu.memory_space<vmem>>, vector<32x64xbf16>
    %75 = arith.truncf %66 : vector<64x64xf32> to vector<64x64xbf16>
    %cst_44 = arith.constant dense<0.000000e+00> : vector<32x64xf32>
    %76 = tpu.matmul %74, %75, %cst_44 {dimension_numbers = #tpu.dot_dimension_numbers<[1], [0], [0], [1], [0, 0, 1, 1], [], []>} : vector<32x64xbf16>, vector<64x64xbf16>, vector<32x64xf32> -> vector<32x64xf32>
    %77 = arith.addf %73, %76 : vector<32x64xf32>
    %c0_45 = arith.constant 0 : index
    %c0_46 = arith.constant 0 : index
    %78 = vector.load %arg21[%c0_45, %c0_46] : memref<32x64xf32, #tpu.memory_space<vmem>>, vector<32x64xf32>
    tpu.vector_store %arg21[%c0_45, %c0_46], %77 {strides = array<i32>} : memref<32x64xf32, #tpu.memory_space<vmem>>, vector<32x64xf32>,
    %79 = arith.index_cast %1 : i32 to index
    %c0_47 = arith.constant 0 : index
    %80 = vector.load %arg16[%79, %c0_47] : memref<64x32xf32, #tpu.memory_space<vmem>>, vector<64x32xf32>
    tpu.vector_store %arg16[%79, %c0_47], %55 {strides = array<i32>} : memref<64x32xf32, #tpu.memory_space<vmem>>, vector<64x32xf32>,
    %c0_i32_48 = arith.constant 0 : i32
    %81 = arith.cmpi eq, %arg1, %c0_i32_48 : i32
    %82 = arith.extui %81 : i1 to i32
    %c0_i32_49 = arith.constant 0 : i32
    %83 = arith.cmpi ne, %82, %c0_i32_49 : i32
    scf.if %83 {
      %c0_52 = arith.constant 0 : index
      %c0_53 = arith.constant 0 : index
      %89 = vector.load %arg20[%c0_52, %c0_53] : memref<32x64xf32, #tpu.memory_space<vmem>>, vector<32x64xf32>
      %c0_54 = arith.constant 0 : index
      %c0_55 = arith.constant 0 : index
      %90 = vector.load %arg21[%c0_54, %c0_55] : memref<32x64xf32, #tpu.memory_space<vmem>>, vector<32x64xf32>
      %91 = vector.extract_strided_slice %89 {offsets = [0, 0], sizes = [32, 32], strides = [1, 1]} : vector<32x64xf32> to vector<32x32xf32>
      %92 = vector.extract_strided_slice %89 {offsets = [0, 32], sizes = [32, 32], strides = [1, 1]} : vector<32x64xf32> to vector<32x32xf32>
      %cst_56 = arith.constant 9.99999997E-7 : f32
      %93 = vector.broadcast %cst_56 : f32 to vector<32x32xf32>
      %94 = arith.addf %92, %93 : vector<32x32xf32>
      %95 = tpu.reciprocal %94 {approx = true} : vector<32x32xf32> -> vector<32x32xf32>
      %96 = arith.mulf %91, %95 : vector<32x32xf32>
      %97 = vector.extract_strided_slice %90 {offsets = [0, 0], sizes = [32, 32], strides = [1, 1]} : vector<32x64xf32> to vector<32x32xf32>
      %98 = vector.extract_strided_slice %90 {offsets = [0, 32], sizes = [32, 32], strides = [1, 1]} : vector<32x64xf32> to vector<32x32xf32>
      %cst_57 = arith.constant 9.99999997E-7 : f32
      %99 = vector.broadcast %cst_57 : f32 to vector<32x32xf32>
      %100 = arith.addf %98, %99 : vector<32x32xf32>
      %101 = tpu.reciprocal %100 {approx = true} : vector<32x32xf32> -> vector<32x32xf32>
      %102 = arith.mulf %97, %101 : vector<32x32xf32>
      %c0_58 = arith.constant 0 : index
      %c0_59 = arith.constant 0 : index
      %103 = vector.load %arg17[%c0_58, %c0_59] : memref<32x32xf32, #tpu.memory_space<vmem>>, vector<32x32xf32>
      %104 = arith.addf %103, %96 : vector<32x32xf32>
      %105 = arith.addf %104, %102 : vector<32x32xf32>
      %c0_60 = arith.constant 0 : index
      %c0_61 = arith.constant 0 : index
      %c0_62 = arith.constant 0 : index
      %c0_63 = arith.constant 0 : index
      %106 = vector.load %arg12[%c0_60, %c0_61, %c0_62, %c0_63] : memref<1x4x1x32xf32, #tpu.memory_space<vmem>>, vector<1x1x1x32xf32>
      %107 = vector.shape_cast %106 : vector<1x1x1x32xf32> to vector<1x32xf32>
      %c0_64 = arith.constant 0 : index
      %c1 = arith.constant 1 : index
      %c0_65 = arith.constant 0 : index
      %c0_66 = arith.constant 0 : index
      %108 = vector.load %arg12[%c0_64, %c1, %c0_65, %c0_66] : memref<1x4x1x32xf32, #tpu.memory_space<vmem>>, vector<1x1x1x32xf32>
      %109 = vector.shape_cast %108 : vector<1x1x1x32xf32> to vector<1x32xf32>
      %cst_67 = arith.constant dense<0.000000e+00> : vector<32xf32>
      %110 = vector.multi_reduction <add>, %105, %cst_67 [1] : vector<32x32xf32> to vector<32xf32>
      %111 = vector.shape_cast %110 : vector<32xf32> to vector<32x1xf32>
      %cst_68 = arith.constant 3.200000e+01 : f32
      %112 = vector.broadcast %cst_68 : f32 to vector<32x1xf32>
      %113 = arith.divf %111, %112 : vector<32x1xf32>
      %114 = vector.broadcast %113 : vector<32x1xf32> to vector<32x32xf32>
      %115 = arith.subf %105, %114 : vector<32x32xf32>
      %116 = arith.mulf %115, %115 : vector<32x32xf32>
      %cst_69 = arith.constant dense<0.000000e+00> : vector<32xf32>
      %117 = vector.multi_reduction <add>, %116, %cst_69 [1] : vector<32x32xf32> to vector<32xf32>
      %118 = vector.shape_cast %117 : vector<32xf32> to vector<32x1xf32>
      %cst_70 = arith.constant 3.200000e+01 : f32
      %119 = vector.broadcast %cst_70 : f32 to vector<32x1xf32>
      %120 = arith.divf %118, %119 : vector<32x1xf32>
      %cst_71 = arith.constant 9.99999974E-6 : f32
      %121 = vector.broadcast %cst_71 : f32 to vector<32x1xf32>
      %122 = arith.addf %120, %121 : vector<32x1xf32>
      %123 = math.rsqrt %122 : vector<32x1xf32>
      %124 = vector.broadcast %123 : vector<32x1xf32> to vector<32x32xf32>
      %125 = arith.mulf %115, %124 : vector<32x32xf32>
      %126 = vector.broadcast %107 : vector<1x32xf32> to vector<32x32xf32>
      %127 = arith.mulf %125, %126 : vector<32x32xf32>
      %128 = vector.broadcast %109 : vector<1x32xf32> to vector<32x32xf32>
      %129 = arith.addf %127, %128 : vector<32x32xf32>
      %cst_72 = arith.constant 0.000000e+00 : f32
      %130 = vector.broadcast %cst_72 : f32 to vector<32x32xf32>
      %131 = arith.maximumf %129, %130 : vector<32x32xf32>
      %c0_73 = arith.constant 0 : index
      %c0_74 = arith.constant 0 : index
      %132 = vector.load %arg15[%c0_73, %c0_74] : memref<32x32xf32, #tpu.memory_space<vmem>>, vector<32x32xf32>
      %133 = arith.addf %131, %132 : vector<32x32xf32>
      %c0_75 = arith.constant 0 : index
      %c0_76 = arith.constant 0 : index
      %134 = vector.load %arg15[%c0_75, %c0_76] : memref<32x32xf32, #tpu.memory_space<vmem>>, vector<32x32xf32>
      tpu.vector_store %arg15[%c0_75, %c0_76], %133 {strides = array<i32>} : memref<32x32xf32, #tpu.memory_space<vmem>>, vector<32x32xf32>,
      %c0_77 = arith.constant 0 : index
      %c0_78 = arith.constant 0 : index
      %135 = vector.load %arg13[%c0_77, %c0_78] : memref<32x32xf32, #tpu.memory_space<vmem>>, vector<32x32xf32>
      tpu.vector_store %arg13[%c0_77, %c0_78], %133 {strides = array<i32>} : memref<32x32xf32, #tpu.memory_space<vmem>>, vector<32x32xf32>,
    } else {
    }
    %c1_i32 = arith.constant 1 : i32
    %84 = arith.cmpi eq, %arg0, %c1_i32 : i32
    %c0_i32_50 = arith.constant 0 : i32
    %85 = arith.cmpi eq, %arg1, %c0_i32_50 : i32
    %86 = arith.andi %84, %85 : i1
    %87 = arith.extui %86 : i1 to i32
    %c0_i32_51 = arith.constant 0 : i32
    %88 = arith.cmpi ne, %87, %c0_i32_51 : i32
    scf.if %88 {
      tpu.enqueue_dma source(%arg16 : memref<64x32xf32, #tpu.memory_space<vmem>>) target(%arg14 : memref<64x32xf32, #tpu.memory_space<any>>) target_semaphore(%arg22 : memref<!tpu.dma_semaphore, #tpu.memory_space<semaphore_mem>>)
      tpu.wait_dma2 semaphore(%arg22 : memref<!tpu.dma_semaphore, #tpu.memory_space<semaphore_mem>>) src(%arg16 : memref<64x32xf32, #tpu.memory_space<vmem>>) dst(%arg14 : memref<64x32xf32, #tpu.memory_space<any>>)
    } else {
    }
    return
  }
  func.func @transform_0(%arg0: i32, %arg1: i32) -> (i32, i32) {
    %c0_i32 = arith.constant 0 : i32
    %c0_i32_0 = arith.constant 0 : i32
    %c0_i32_1 = arith.constant 0 : i32
    return %c0_i32, %c0_i32_0 : i32, i32
  }
  func.func @transform_2(%arg0: i32, %arg1: i32) -> (i32, i32) {
    %c0_i32 = arith.constant 0 : i32
    %c0_i32_0 = arith.constant 0 : i32
    return %arg1, %c0_i32 : i32, i32
  }
  func.func @transform_3(%arg0: i32, %arg1: i32) -> (i32, i32) {
    %c0_i32 = arith.constant 0 : i32
    %c0_i32_0 = arith.constant 0 : i32
    return %arg1, %c0_i32 : i32, i32
  }
  func.func @transform_4(%arg0: i32, %arg1: i32) -> (i32, i32) {
    %c0_i32 = arith.constant 0 : i32
    %c0_i32_0 = arith.constant 0 : i32
    return %c0_i32, %arg1 : i32, i32
  }
  func.func @transform_5(%arg0: i32, %arg1: i32) -> (i32, i32) {
    %c0_i32 = arith.constant 0 : i32
    %c0_i32_0 = arith.constant 0 : i32
    return %c0_i32, %arg1 : i32, i32
  }
  func.func @transform_6(%arg0: i32, %arg1: i32) -> (i32, i32, i32) {
    %c0_i32 = arith.constant 0 : i32
    %c0_i32_0 = arith.constant 0 : i32
    %c0_i32_1 = arith.constant 0 : i32
    return %arg0, %c0_i32, %c0_i32_0 : i32, i32, i32
  }
  func.func @transform_7(%arg0: i32, %arg1: i32) -> (i32, i32, i32) {
    %c0_i32 = arith.constant 0 : i32
    %c0_i32_0 = arith.constant 0 : i32
    %c0_i32_1 = arith.constant 0 : i32
    return %arg0, %c0_i32, %c0_i32_0 : i32, i32, i32
  }
  func.func @transform_8(%arg0: i32, %arg1: i32) -> (i32, i32, i32) {
    %c0_i32 = arith.constant 0 : i32
    %c0_i32_0 = arith.constant 0 : i32
    %c0_i32_1 = arith.constant 0 : i32
    return %arg0, %c0_i32, %c0_i32_0 : i32, i32, i32
  }
  func.func @transform_9(%arg0: i32, %arg1: i32) -> (i32, i32, i32) {
    %c0_i32 = arith.constant 0 : i32
    %c0_i32_0 = arith.constant 0 : i32
    %c0_i32_1 = arith.constant 0 : i32
    return %arg0, %c0_i32, %c0_i32_0 : i32, i32, i32
  }
  func.func @transform_10(%arg0: i32, %arg1: i32) -> (i32, i32, i32, i32) {
    %c0_i32 = arith.constant 0 : i32
    %c0_i32_0 = arith.constant 0 : i32
    %c0_i32_1 = arith.constant 0 : i32
    %c0_i32_2 = arith.constant 0 : i32
    return %arg0, %c0_i32, %c0_i32_0, %c0_i32_1 : i32, i32, i32, i32
  }
  func.func @transform_11(%arg0: i32, %arg1: i32) -> (i32, i32) {
    %c0_i32 = arith.constant 0 : i32
    %c0_i32_0 = arith.constant 0 : i32
    %c0_i32_1 = arith.constant 0 : i32
    return %c0_i32, %c0_i32_0 : i32, i32
  }
}

</mosaic_0001>

<bundles_post_ra>
// kernel: _run_processor.1
= control target key start
LH: loop header
LB: loop body
LE: loop exit
PB: predicated region body
PF: predicated region fallthrough
CT: control target
= control target key end

     0   :  { %s3356_s0 = inlined_call_operand.vmem [shape: f32[32,32], index: 0, kind: input, shape index: {}]   ;;  %s3357_s1 = inlined_call_operand.vmem [shape: f32[64,32], index: 1, kind: input, shape index: {}]   ;;  %s3358_s2 = inlined_call_operand.vmem [shape: bf16[64,32], index: 2, kind: input, shape index: {}]   ;;  %s3359_s3 = inlined_call_operand.vmem [shape: bf16[64,32], index: 3, kind: input, shape index: {}]   ;;  %s3360_s4 = inlined_call_operand.vmem [shape: bf16[32,64], index: 4, kind: input, shape index: {}]   ;;  %s3361_s5 = inlined_call_operand.vmem [shape: bf16[32,64], index: 5, kind: input, shape index: {}]   ;;  %s3362_s6 = inlined_call_operand.hbm [shape: f32[2,32,160], index: 6, kind: input, shape index: {}]   ;;  %s3363_s7 = inlined_call_operand.vmem [shape: f32[2,1,160], index: 7, kind: input, shape index: {}]   ;;  %s3364_s8 = inlined_call_operand.vmem [shape: f32[2,32,32], index: 8, kind: input, shape index: {}]   ;;  %s3365_s9 = inlined_call_operand.vmem [shape: f32[2,1,32], index: 9, kind: input, shape index: {}]   ;;  %s3366_s10 = inlined_call_operand.vmem [shape: f32[2,4,1,32], index: 10, kind: input, shape index: {}]   ;;  %s3367_s11 = inlined_call_operand.hbm [shape: f32[32,32], index: 11, kind: output, shape index: {0}]   ;;  %s3368_s12 = inlined_call_operand.vmem [shape: f32[64,32], index: 12, kind: output, shape index: {1}]  }
   0x1   :  { %3374 = sst [smem:[#allocation24_spill]] %s3362_s6 }
   0x2   :  { %3375 = sst [smem:[#allocation25_spill]] %s3367_s11 }
   0x3   :  { %3376 = sst [smem:[#allocation26_spill]] %s3368_s12 }
   0x4   :  { %18 = vsyncpa [#allocation11], 0 }
   0x5   :  { %20 = vsyncpa [#allocation11 + $0x1], 0 }
   0x6   :  { %21 = vsyncpa [#allocation12], 0  ;;  %s2607_s21 = smov 0   ;;  %s2609_s22 = smov 0  }
   0x7   :  { %s2611_s23 = smov 0   ;;  %s2613_s24 = smov 0  }
   0x8   :  { %s2615_s25 = smov 0   ;;  %s2617_s26 = smov 0  }
   0x9 LB: > { %3377 = sst [smem:[#allocation20_spill]] %s2519_s23  ;;  %s3371_s27 = sadd.s32 4294967295, %s2531_s26   ;;  %s2531_s26 = sphi %s2617_s26, %s27_s26   ;;  %s2527_s25 = sphi %s2615_s25, %s3392_s25   ;;  %s2523_s24 = sphi %s2613_s24, %s3391_s24   ;;  %s2519_s23 = sphi %s2611_s23, %s3390_s23   ;;  %s2515_s22 = sphi %s2609_s22, %s3394_s22   ;;  %s2511_s21 = sphi %s2607_s21, %s3393_s21  }
   0xa   : > { %3378 = sst [smem:[#allocation21_spill]] %s2527_s25  ;;  %s39_s28 = sadd.s32 1, %s2527_s25 }
   0xb   : > { %p41_p0 = scmp.ge.s32.totalorder %s39_s28, 2  ;;  %s171_s29 = sadd.s32 1, %s2519_s23 }
   0xc   : > { %p178_p1 = scmp.ne.s32.totalorder %s2519_s23, %s2515_s22  ;;  %p179_p2 = scmp.eq.s32.totalorder %s2531_s26, 0 }
   0xd   : > { %s3396_s28 = smov (%p41_p0, %s39_s28), 0  ;;  %p184_p4 = scmp.ne.s32.totalorder %s2515_s22, %s2511_s21 }
   0xe   : > { %3379 = sst [smem:[#allocation22_spill]] %s3396_s28  ;;  %p2643_p3 = por %p179_p2, %p178_p1 }
   0xf   : > { %s168_s13 = ssub.s32 %s2527_s25, %s3396_s28  ;;  %p185_p5 = scmp.eq.s32.totalorder %s3371_s27, 0 }
  0x10   : > { %p169_p6 = scmp.eq.s32.totalorder %s168_s13, 0  ;;  %p2236_p8 = scmp.lt.s32.totalorder %s2531_s26, 2 }
  0x11   : > { %p2652_p7 = por %p185_p5, %p184_p4  ;;  %s368_s16 = sand.u32 1, %s2519_s23  }
  0x12   : > { %s2658_s15 = scalar_select %p169_p6, %s2519_s23, %s171_s29  }
  0x13   : > { %s2198_s17 = sshll.u32 %s2527_s25, 6  ;;  %s2079_s18 = sshll.u32 %s368_s16, 6 }
  0x14   : > { %3382 = sst [smem:[#allocation23_spill]] %s2658_s15  ;;  %s372_s11 = scalar_lea.vmem [#allocation10], %s2079_s18 }
  0x15   : > { %s3383_s6 = sld [smem:[#allocation24_spill]]  ;;  %s380_s12 = sshll.u32 %s372_s11, 4  ;;  %s381_s12 = int_to_ptr.vmem [resolvable:$true] %s380_s12 }
  0x16   : > { %p2233_p9 = pnand %p2236_p8, %p2643_p3  ;;  %p2082_p10 = scmp.ge.s32.totalorder %s2531_s26, 1 }
  0x17   : > { %p416_p11 = scmp.lt.s32.totalorder %s2531_s26, 3  ;;  %s369_s13 = scalar_lea.sflag [#allocation11], %s368_s16 }
  0x18   : > { %s2533_s27 = smov 256   ;;  %s2534_s29 = smov 16  }
  0x19   : > { %p417_p12 = pnand %p2082_p10, %p416_p11 }
  0x1a   : > { %s422_s25 = sand.u32 (!%p417_p12), 1, %s2515_s22  }
  0x1b   : > { %s377_s21 = scalar_lea.hbm %s3383_s6, %s2198_s17  ;;  %420 = sbr.rel (%p417_p12) target bundleno = 1692 (0x69c), region = 60 }
  0x1c   : > { %s378_s28 = sshll.u32 %s377_s21, 4  ;;  %s2083_s19 = sshll.u32 (!%p417_p12), %s422_s25, 6  ;;  %s379_s28 = int_to_ptr.hbm [resolvable:$true] %s378_s28 }
  0x1d   : > { %2235 = dma.hbm_to_vmem [thread:$0]  (!%p2233_p9), %s379_s28, 1024, %s381_s12, %s369_s13, %s2533_s27, %s2533_s27, %s2534_s29  }
  0x1e   : > { %s423_s17 = scalar_lea.sflag (!%p417_p12), [#allocation11], %s422_s25  ;;  %s2670_s20 = scalar_lea.vmem (!%p417_p12), [#allocation10], %s2083_s19 }
  0x20   : > { %2498 = dma.done.wait (%p2652_p7), %s423_s17, 1024  }
  0x21   : > { %2500 = vsyncadd (%p2652_p7), %s423_s17, 4294966272  ;;  %p513_p13 = scmp.lt.s32.totalorder %s2523_s24, 1  ;;  %p531_p0 = scmp.eq.s32.totalorder %s2523_s24, 0 }
  0x22   : > { %v537_v0 = vld [vmem:[%s3356_s0] sm:$0xff] (%p531_p0)  ;;  %vm541_vm0 = vcmask (%p531_p0), 261120   ;;  %v538_v1 = vld [vmem:[%s3356_s0 + $0x8] sm:$0xff] (%p531_p0)  ;;  %v539_v2 = vld [vmem:[%s3356_s0 + $0x10] sm:$0xff] (%p531_p0) }
  0x23   : > { %s2679_s11 = scalar_select %p513_p13, %s2523_s24, 1  ;;  %542 = vst.msk [vmem:[#allocation2] sm:$0xff] (%p531_p0), %vm541_vm0, %v537_v0  ;;  %v540_v3 = vld [vmem:[%s3356_s0 + $0x18] sm:$0xff] (%p531_p0)  ;;  %v556_v4 = vld [vmem:[%s3357_s1] sm:$0xff] (%p531_p0)  ;;  %v558_v5 = vld [vmem:[%s3357_s1 + $0x8] sm:$0xff] (%p531_p0) }
  0x24   : > { %536 = sbr.rel (!%p531_p0) target bundleno = 50 (0x32), region = 68  ;;  %543 = vst.msk [vmem:[#allocation2 + $0x8] sm:$0xff] (%p531_p0), %vm541_vm0, %v538_v1  ;;  %v560_v6 = vld [vmem:[%s3357_s1 + $0x10] sm:$0xff] (%p531_p0)  ;;  %v562_v7 = vld [vmem:[%s3357_s1 + $0x18] sm:$0xff] (%p531_p0)  ;;  %v564_v8 = vld [vmem:[%s3357_s1 + $0x20] sm:$0xff] (%p531_p0) }
  0x25   : > { %s2084_s12 = sshll.u32 %s2679_s11, 1  ;;  %s2199_s25 = sshll.u32 %s2679_s11, 5  ;;  %544 = vst.msk [vmem:[#allocation2 + $0x10] sm:$0xff] (%p531_p0), %vm541_vm0, %v539_v2  ;;  %v566_v9 = vld [vmem:[%s3357_s1 + $0x28] sm:$0xff] (%p531_p0)  ;;  %v568_v10 = vld [vmem:[%s3357_s1 + $0x30] sm:$0xff] (%p531_p0)  ;;  %v570_v11 = vld [vmem:[%s3357_s1 + $0x38] sm:$0xff] (%p531_p0) }
  0x26   : > { %s2686_s30 = scalar_lea.vmem %s3363_s7, %s2084_s12  ;;  %s2691_s18 = scalar_lea.vmem %s3364_s8, %s2199_s25  ;;  %545 = vst.msk [vmem:[#allocation2 + $0x18] sm:$0xff] (%p531_p0), %vm541_vm0, %v540_v3 }
  0x27   : > { %s524_s29 = scalar_lea.vmem %s3365_s9, %s2679_s11  ;;  %s2087_s19 = sshll.u32 %s2679_s11, 2  ;;  %557 = vst [vmem:[#allocation3] sm:$0xff] (%p531_p0), %v556_v4 }
  0x28   : > { %s2701_s15 = scalar_lea.vmem %s3366_s10, %s2087_s19  ;;  %559 = vst [vmem:[#allocation3 + $0x8] sm:$0xff] (%p531_p0), %v558_v5 }
  0x29   : > { %561 = vst [vmem:[#allocation3 + $0x10] sm:$0xff] %v560_v6 }
  0x2a   : > { %563 = vst [vmem:[#allocation3 + $0x18] sm:$0xff] %v562_v7 }
  0x2b   : > { %565 = vst [vmem:[#allocation3 + $0x20] sm:$0xff] %v564_v8 }
  0x2c   : > { %567 = vst [vmem:[#allocation3 + $0x28] sm:$0xff] %v566_v9 }
  0x2d   : > { %569 = vst [vmem:[#allocation3 + $0x30] sm:$0xff] %v568_v10 }
  0x2e   : > { %571 = vst [vmem:[#allocation3 + $0x38] sm:$0xff] %v570_v11 }
  0x2f   : > { %577 = vsyncadd [#allocation9], 1024 }
  0x30   : > { %2501 = dma.done.wait [#allocation9], 1024 }
  0x31   : > { %2502 = vsyncadd [#allocation9], 4294966272 }
  0x32 PF: > { %v594_v12 = vld [vmem:[%s2670_s20 + $0x30] sm:$0xff]  ;;  %v595_v13 = vld [vmem:[%s2670_s20 + $0x38] sm:$0xff]  ;;  %v592_v14 = vld [vmem:[%s2670_s20 + $0x20] sm:$0xff]  ;;  %vm602_vm1 = vcmask 261120   ;;  %vm697_vm2 = vcmask 519168   ;;  %p1841_p1 = scmp.eq.s32.totalorder %s2523_s24, 1 }
  0x33   : > { %2218 = vmatpush.msra.mxu2 %v594_v12  ;;  %2222 = vmatpush.msra.mxu3 %v595_v13  ;;  %v593_v15 = vld [vmem:[%s2670_s20 + $0x28] sm:$0xff]  ;;  %v590_v16 = vld [vmem:[%s2670_s20 + $0x10] sm:$0xff]  ;;  %v591_v17 = vld [vmem:[%s2670_s20 + $0x18] sm:$0xff]  ;;  %s3386_s13 = sld [smem:[#allocation26_spill]] (%p1841_p1) }
  0x34   : > { %627 = vmatpush.msra.mxu0 %v594_v12  ;;  %656 = vmatpush.msra.mxu1 %v595_v13  ;;  %v588_v18 = vld [vmem:[%s2670_s20] sm:$0xff]  ;;  %v589_v19 = vld [vmem:[%s2670_s20 + $0x8] sm:$0xff]  ;;  %s2535_s20 = smov 96   ;;  %v756_v53 = vld [vmem:[%s2691_s18 + $0x18] sm:$0xff] }
  0x35   : > { %2219 = vmatpush.msra.mxu2 %v592_v14  ;;  %2223 = vmatpush.msra.mxu3 %v593_v15  ;;  %v586_v20 = vld [vmem:[#allocation2 + $0x10] sm:$0xff]  ;;  %v584_v21 = vld [vmem:[#allocation2] sm:$0xff]  ;;  %v585_v23 = vld [vmem:[#allocation2 + $0x8] sm:$0xff] }
  0x36   : > { %628 = vmatpush.msra.mxu0 %v592_v14  ;;  %657 = vmatpush.msra.mxu1 %v593_v15  ;;  %v587_v22 = vld [vmem:[#allocation2 + $0x18] sm:$0xff]  ;;  %v596_v24 = vld [vmem:[%s2686_s30] sm:$0x3]  ;;  %s2536_s30 = smov 32   ;;  %v755_v54 = vld [vmem:[%s2691_s18 + $0x10] sm:$0xff] }
  0x37   : > { %2220 = vmatpush.msra.mxu2 %v590_v16  ;;  %2224 = vmatpush.msra.mxu3 %v591_v17  ;;  %v598_v25 = vperm.slane %v596_v24, 0  ;;  %v599_v27 = vperm.slane %v596_v24, 1  ;;  %v754_v55 = vld [vmem:[%s2691_s18 + $0x8] sm:$0xff]  ;;  %v753_v56 = vld [vmem:[%s2691_s18] sm:$0xff]  ;;  %v2792_v9 = vld [vmem:[#allocation3 + $0x18] sm:$0xff] }
  0x38   : > { %629 = vmatpush.msra.mxu0 %v590_v16  ;;  %658 = vmatpush.msra.mxu1 %v591_v17  ;;  %v2774_v57 = vld [vmem:[#allocation3] sm:$0xff]  ;;  %v2779_v61 = vld [vmem:[#allocation3 + $0x8] sm:$0xff]  ;;  %v2209_v24 = vld [vmem:[%s3359_s3 + $0x10] sm:$0xff] }
  0x39   : > { %2221 = vmatpush.msra.mxu2 %v588_v18  ;;  %2225 = vmatpush.msra.mxu3 %v589_v19  ;;  %v2786_v2 = vld [vmem:[#allocation3 + $0x10] sm:$0xff]  ;;  %v2201_v14 = vld [vmem:[%s3358_s2] sm:$0xff] }
  0x3a   : > { %2091 = vmatmul.msk.f32.vlgmr.msra.gmra.mxu2 %vm602_vm1, %v586_v20  ;;  %2095 = vmatmul.msk.f32.vlgmr.msra.gmra.mxu3 %vm602_vm1, %v586_v20  ;;  %v2804_v15 = vld [vmem:[#allocation3 + $0x20] sm:$0xff]  ;;  %v2820_v20 = vld [vmem:[#allocation3 + $0x30] sm:$0xff] }
  0x3b   : > { %630 = vmatpush.msra.mxu0 %v588_v18  ;;  %659 = vmatpush.msra.mxu1 %v589_v19  ;;  %v2207_v17 = vld [vmem:[%s3359_s3] sm:$0xff]  ;;  %v2812_v18 = vld [vmem:[#allocation3 + $0x28] sm:$0xff] }
  0x3c   : > { %2089 = vmatmul.msk.f32.vlgmr.msra.gmra.mxu0 %vm602_vm1, %v584_v21  ;;  %2093 = vmatmul.msk.f32.vlgmr.msra.gmra.mxu1 %vm602_vm1, %v584_v21  ;;  %v2202_v19 = vld [vmem:[%s3358_s2 + $0x8] sm:$0xff] }
  0x3d   : > { %798 = vmatpush.msrb.mxu2 %v756_v53  ;;  %v2208_v21 = vld [vmem:[%s3359_s3 + $0x8] sm:$0xff] }
  0x3f   : > { %799 = vmatpush.msrb.mxu2 %v755_v54 }
  0x41   : > { %800 = vmatpush.msrb.mxu2 %v754_v55 }
  0x42   : > { %2092 = vmatmul.msk.f32.gmra.mxu2 %vm602_vm1, %v587_v22  ;;  %2096 = vmatmul.msk.f32.gmra.mxu3 %vm602_vm1, %v587_v22  ;;  %v2828_v22 = vld [vmem:[#allocation3 + $0x38] sm:$0xff] }
  0x43   : > { %801 = vmatpush.msrb.mxu2 %v753_v56 }
  0x44   : > { %2090 = vmatmul.msk.f32.gmra.mxu0 %vm602_vm1, %v585_v23  ;;  %2094 = vmatmul.msk.f32.gmra.mxu1 %vm602_vm1, %v585_v23  ;;  %v2203_v23 = vld [vmem:[%s3358_s2 + $0x10] sm:$0xff] }
  0x4a   : > { %2097 = vmatmul.msk.f32.vlgmr.msrb.gmra.mxu2 %vm602_vm1, %v2774_v57 }
  0x52   : > { %2098 = vmatmul.msk.f32.gmra.mxu2 %vm602_vm1, %v2779_v61 }
  0x5a   : > { %2099 = vmatmul.msk.f32.gmra.mxu2 %vm602_vm1, %v2786_v2 }
  0x62   : > { %2100 = vmatmul.msk.f32.gmra.mxu2 %vm602_vm1, %v2792_v9 }
  0x6a   : > { %2101 = vmatmul.msk.f32.gmra.mxu2 %vm602_vm1, %v2804_v15 }
  0x72   : > { %2102 = vmatmul.msk.f32.gmra.mxu2 %vm602_vm1, %v2812_v18 }
  0x7a   : > { %2103 = vmatmul.msk.f32.gmra.mxu2 %vm602_vm1, %v2820_v20 }
  0x82   : > { %2104 = vmatmul.msk.f32.gmra.mxu2 %vm602_vm1, %v2828_v22 }
  0xb9   : > { %v632_v26 = vpop.f32.mrf.mxu0  ;;  %v661_v29 = vpop.f32.mrf.mxu1 }
  0xba   : > { %v633_v28 = vadd.f32 %v632_v26, %v598_v25  ;;  %v662_v48 = vadd.f32 %v661_v29, %v599_v27  ;;  %v2210_v26 = vld [vmem:[%s3359_s3 + $0x18] sm:$0xff] }
  0xbc   : > { %673 = vst.msk [vmem:[#allocation4] sm:$0xff] %vm602_vm1, %v633_v28  ;;  %v677_v30 = vpack.c.bf16 %v633_v28, %v633_v28  ;;  %v702_v50 = vpack.c.bf16 %v662_v48, %v633_v28 }
  0xbd   : > { %v638_v31 = vpop.f32.mrf.mxu2  ;;  %v667_v32 = vpop.f32.mrf.mxu3 }
  0xbe   : > { %v639_v33 = vadd.f32 %v638_v31, %v598_v25  ;;  %v668_v34 = vadd.f32 %v667_v32, %v599_v27  ;;  %685 = vrot.lane.b32.xlu2 %v677_v30, %s2535_s20 }
  0xc0   : > { %675 = vst.msk [vmem:[#allocation4 + $0x10] sm:$0xff] %vm602_vm1, %v639_v33  ;;  %v704_v35 = vpack.c.bf16 %v668_v34, %v639_v33  ;;  %v679_v36 = vpack.c.bf16 %v639_v33, %v639_v33 }
  0xc1   : > { %v635_v37 = vpop.f32.mrf.mxu0  ;;  %v664_v44 = vpop.f32.mrf.mxu1 }
  0xc2   : > { %714 = vrot.lane.b32.xlu1 %v704_v35, %s2536_s30  ;;  %689 = vrot.lane.b32.xlu0 %v679_v36, %s2535_s20  ;;  %v636_v38 = vadd.f32 %v635_v37, %v598_v25  ;;  %v665_v47 = vadd.f32 %v664_v44, %v599_v27 }
  0xc4   : > { %674 = vst.msk [vmem:[#allocation4 + $0x8] sm:$0xff] %vm602_vm1, %v636_v38  ;;  %v678_v39 = vpack.c.bf16 %v636_v38, %v636_v38  ;;  %v703_v49 = vpack.c.bf16 %v665_v47, %v636_v38 }
  0xc5   : > { %v641_v40 = vpop.f32.mrf.mxu2  ;;  %v670_v41 = vpop.f32.mrf.mxu3 }
  0xc6   : > { %v642_v42 = vadd.f32 %v641_v40, %v598_v25  ;;  %v671_v43 = vadd.f32 %v670_v41, %v599_v27  ;;  %687 = vrot.lane.b32.xlu2 %v678_v39, %s2535_s20  ;;  %v2204_v25 = vld [vmem:[%s3358_s2 + $0x18] sm:$0xff]  ;;  %v2336_v40 = vld [vmem:[%s524_s29] ss:$0 sm:$0xff] }
  0xc8   : > { %676 = vst.msk [vmem:[#allocation4 + $0x18] sm:$0xff] %vm602_vm1, %v642_v42  ;;  %v705_v45 = vpack.c.bf16 %v671_v43, %v642_v42  ;;  %v680_v46 = vpack.c.bf16 %v642_v42, %v642_v42 }
  0xca   : > { %716 = vrot.lane.b32.xlu1 %v705_v45, %s2536_s30  ;;  %691 = vrot.lane.b32.xlu0 %v680_v46, %s2535_s20 }
  0xcd   : > { %v803_v27 = vpop.f32.mrf.mxu2 }
  0xce   : > { %v804_v47 = vadd.f32 %v2336_v40, %v803_v27 }
  0xd2   : > { %712 = vrot.lane.b32.xlu1 %v703_v49, %s2536_s30  ;;  %710 = vrot.lane.b32.xlu0 %v702_v50, %s2536_s30 }
  0xd5   : > { %v806_v28 = vpop.f32.mrf.mxu2 }
  0xdd   : > { %v809_v31 = vpop.f32.mrf.mxu2 }
  0xe5   : > { %v812_v34 = vpop.f32.mrf.mxu2 }
  0xed   : > { %v815_v38 = vpop.f32.mrf.mxu2 }
  0xee   : > { %v816_v42 = vadd.f32 %v2336_v40, %v815_v38 }
  0xf5   : > { %v818_v44 = vpop.f32.mrf.mxu2 }
  0xfd   : > { %v821_v55 = vpop.f32.mrf.mxu2 }
 0x118   : > { %v686_v51 = vpop.permute.xlu2 %685 }
 0x119   : > { %698 = vst.msk [vmem:[#allocation5] sm:$0xf] %vm697_vm2, %v686_v51  ;;  %v819_v51 = vadd.f32 %v2336_v40, %v818_v44 }
 0x120   : > { %v688_v52 = vpop.permute.xlu2 %687 }
 0x121   : > { %699 = vst.msk [vmem:[#allocation5 + $0x4] sm:$0xf] %vm697_vm2, %v688_v52 }
 0x128   : > { %v2205_v13 = vld [vmem:[#allocation5] sm:$0xff] }
 0x134   : > { %v715_v58 = vpop.permute.xlu1 %714  ;;  %v690_v59 = vpop.permute.xlu0 %689 }
 0x135   : > { %v720_v60 = vrot.slane %v715_v58, 4  ;;  %700 = vst.msk [vmem:[#allocation5 + $0x8] sm:$0xf] %vm697_vm2, %v690_v59 }
 0x137   : > { %v725_v62 = vsel %vm602_vm1, %v715_v58, %v720_v60 }
 0x138   : > { %733 = vst.msk [vmem:[#allocation6 + $0x8] sm:$0xf] %vm697_vm2, %v725_v62  ;;  %v822_v62 = vadd.f32 %v2336_v40, %v821_v55 }
 0x13c   : > { %v717_v63 = vpop.permute.xlu1 %716  ;;  %v692_v0 = vpop.permute.xlu0 %691 }
 0x13d   : > { %v721_v1 = vrot.slane %v717_v63, 4  ;;  %701 = vst.msk [vmem:[#allocation5 + $0xc] sm:$0xf] %vm697_vm2, %v692_v0 }
 0x13f   : > { %v726_v3 = vsel %vm602_vm1, %v717_v63, %v721_v1 }
 0x140   : > { %734 = vst.msk [vmem:[#allocation6 + $0xc] sm:$0xf] %vm697_vm2, %v726_v3  ;;  %v824_v3 = vpop.f32.mrf.mxu2 }
 0x144   : > { %v713_v4 = vpop.permute.xlu1 %712  ;;  %v711_v5 = vpop.permute.xlu0 %710  ;;  %v2206_v6 = vld [vmem:[#allocation5 + $0x8] sm:$0xff] }
 0x145   : > { %v719_v7 = vrot.slane %v713_v4, 4  ;;  %v718_v8 = vrot.slane %v711_v5, 4  ;;  %889 = vmatpush.bf16.msrb.mxu3 %v2206_v6 }
 0x147   : > { %v724_v10 = vsel %vm602_vm1, %v713_v4, %v719_v7  ;;  %v723_v11 = vsel %vm602_vm1, %v711_v5, %v718_v8  ;;  %v2212_v12 = vld [vmem:[#allocation6 + $0x8] sm:$0xff]  ;;  %v810_v4 = vadd.f32 %v2336_v40, %v809_v31  ;;  %v825_v8 = vadd.f32 %v2336_v40, %v824_v3 }
 0x148   : > { %732 = vst.msk [vmem:[#allocation6 + $0x4] sm:$0xf] %vm697_vm2, %v724_v10  ;;  %974 = vmatpush.bf16.msrb.mxu0 %v2212_v12 }
 0x149   : > { %731 = vst.msk [vmem:[#allocation6] sm:$0xf] %vm697_vm2, %v723_v11  ;;  %890 = vmatpush.bf16.msrb.mxu3 %v2205_v13 }
 0x14c   : > { %2129 = vmatmul.msk.bf16.vlgmr.msrb.gmra.mxu3 %vm602_vm1, %v2201_v14  ;;  %v807_v14 = vadd.f32 %v2336_v40, %v806_v28  ;;  %v2537_v28 = vmov 32.0  }
 0x14d   : > { %2341 = vrcp.f32 %v2537_v28 }
 0x150   : > { %v2211_v16 = vld [vmem:[#allocation6] sm:$0xff] }
 0x151   : > { %975 = vmatpush.bf16.msrb.mxu0 %v2211_v16  ;;  %v813_v16 = vadd.f32 %v2336_v40, %v812_v34 }
 0x153   : > { %v2342_v31 = vpop.eup %2341 }
 0x154   : > { %2157 = vmatmul.msk.bf16.vlgmr.msrb.gmra.mxu0 %vm602_vm1, %v2207_v17  ;;  %v1042_v34 = vmul.f32 32.0, %v2342_v31  ;;  %vm1046_vm3 = vweird.f32 %v2342_v31 }
 0x156   : > { %v1043_v38 = vsub.f32 1.0, %v1042_v34 }
 0x158   : > { %v1044_v40 = vmul.f32 %v2342_v31, %v1043_v38 }
 0x15c   : > { %2130 = vmatmul.msk.bf16.gmra.mxu3 %vm602_vm1, %v2202_v19 }
 0x164   : > { %2158 = vmatmul.msk.bf16.gmra.mxu0 %vm602_vm1, %v2208_v21 }
 0x16c   : > { %2131 = vmatmul.msk.bf16.gmra.mxu3 %vm602_vm1, %v2203_v23 }
 0x174   : > { %2159 = vmatmul.msk.bf16.gmra.mxu0 %vm602_vm1, %v2209_v24 }
 0x17c   : > { %2132 = vmatmul.msk.bf16.gmra.mxu3 %vm602_vm1, %v2204_v25 }
 0x184   : > { %2160 = vmatmul.msk.bf16.gmra.mxu0 %vm602_vm1, %v2210_v26 }
 0x1cf   : > { %v2848_v29 = vpop.f32.mrf.mxu3 }
 0x1d1   : > { %v2850_v30 = vpop.f32.mrf.mxu0 }
 0x1d2   : > { %v997_v48 = vadd.f32 %v2850_v30, %v2848_v29 }
 0x1d4   : > { %v2884_v54 = vadd.f32 %v997_v48, %v804_v47 }
 0x1d6   : > { %v1017_v58 = vsel %vm602_vm1, %v2884_v54, 0.0 }
 0x1d7   : > { %v2852_v32 = vpop.f32.mrf.mxu3 }
 0x1d9   : > { %v2854_v33 = vpop.f32.mrf.mxu0 }
 0x1da   : > { %v998_v17 = vadd.f32 %v2854_v33, %v2852_v32 }
 0x1dc   : > { %v1006_v24 = vadd.f32 %v998_v17, %v807_v14 }
 0x1de   : > { %v1020_v26 = vsel %vm602_vm1, %v1006_v24, 0.0 }
 0x1df   : > { %v2856_v35 = vpop.f32.mrf.mxu3 }
 0x1e1   : > { %v2858_v36 = vpop.f32.mrf.mxu0 }
 0x1e2   : > { %v999_v5 = vadd.f32 %v2858_v36, %v2856_v35 }
 0x1e4   : > { %v1007_v12 = vadd.f32 %v999_v5, %v810_v4 }
 0x1e6   : > { %v1023_v21 = vsel %vm602_vm1, %v1007_v12, 0.0 }
 0x1e7   : > { %v2860_v37 = vpop.f32.mrf.mxu3 }
 0x1e9   : > { %v2862_v39 = vpop.f32.mrf.mxu0 }
 0x1ea   : > { %v1000_v19 = vadd.f32 %v2862_v39, %v2860_v37 }
 0x1ec   : > { %v1008_v25 = vadd.f32 %v1000_v19, %v813_v16 }
 0x1ee   : > { %v1026_v27 = vsel %vm602_vm1, %v1008_v25, 0.0 }
 0x1ef   : > { %v2869_v41 = vpop.f32.mrf.mxu3 }
 0x1f1   : > { %v2871_v43 = vpop.f32.mrf.mxu0 }
 0x1f2   : > { %v1001_v45 = vadd.f32 %v2871_v43, %v2869_v41 }
 0x1f4   : > { %v1009_v46 = vadd.f32 %v1001_v45, %v816_v42  ;;  %v1045_v42 = vadd.f32 %v2342_v31, %v1044_v40 }
 0x1f6   : > { %v1029_v49 = vsel %vm602_vm1, %v1009_v46, 0.0  ;;  %v2912_v44 = vsel %vm1046_vm3, %v2342_v31, %v1045_v42 }
 0x1f7   : > { %1030 = vadd.xlane.f32.xlu1 %v1029_v49  ;;  %v2878_v50 = vpop.f32.mrf.mxu3 }
 0x1f9   : > { %v2880_v52 = vpop.f32.mrf.mxu0 }
 0x1fa   : > { %v1002_v53 = vadd.f32 %v2880_v52, %v2878_v50 }
 0x1fc   : > { %v1010_v56 = vadd.f32 %v1002_v53, %v819_v51 }
 0x1fe   : > { %v1032_v59 = vsel %vm602_vm1, %v1010_v56, 0.0 }
 0x1ff   : > { %1018 = vadd.xlane.f32.xlu1 %v1017_v58  ;;  %1033 = vadd.xlane.f32.xlu2 %v1032_v59  ;;  %v2889_v60 = vpop.f32.mrf.mxu3 }
 0x201   : > { %v2891_v63 = vpop.f32.mrf.mxu0 }
 0x202   : > { %v1003_v0 = vadd.f32 %v2891_v63, %v2889_v60 }
 0x204   : > { %v1011_v1 = vadd.f32 %v1003_v0, %v822_v62 }
 0x206   : > { %v1035_v6 = vsel %vm602_vm1, %v1011_v1, 0.0 }
 0x207   : > { %1036 = vadd.xlane.f32.xlu2 %v1035_v6  ;;  %v2898_v7 = vpop.f32.mrf.mxu3 }
 0x209   : > { %v2900_v10 = vpop.f32.mrf.mxu0 }
 0x20a   : > { %v1004_v11 = vadd.f32 %v2900_v10, %v2898_v7 }
 0x20c   : > { %v1012_v13 = vadd.f32 %v1004_v11, %v825_v8 }
 0x20e   : > { %v1038_v23 = vsel %vm602_vm1, %v1012_v13, 0.0 }
 0x20f   : > { %1024 = vadd.xlane.f32.xlu2 %v1023_v21  ;;  %1039 = vadd.xlane.f32.xlu0 %v1038_v23 }
 0x217   : > { %1021 = vadd.xlane.f32.xlu2 %v1020_v26  ;;  %1027 = vadd.xlane.f32.xlu0 %v1026_v27 }
 0x26a   : > { %v1031_v45 = vpop.xlane.xlu1 %1030 }
 0x26b   : > { %v1052_v47 = vmul.f32 %v2912_v44, %v1031_v45 }
 0x26d   : > { %v2915_v48 = vsub.f32 %v1009_v46, %v1052_v47 }
 0x26f   : > { %v1068_v49 = vmul.f32 %v2915_v48, %v2915_v48 }
 0x271   : > { %v1084_v51 = vsel %vm602_vm1, %v1068_v49, 0.0 }
 0x272   : > { %v1034_v53 = vpop.xlane.xlu2 %1033  ;;  %1085 = vadd.xlane.f32.xlu2 %v1084_v51  ;;  %v1019_v3 = vpop.xlane.xlu1 %1018 }
 0x273   : > { %v1053_v59 = vmul.f32 %v2912_v44, %v1034_v53  ;;  %v1048_v11 = vmul.f32 %v2912_v44, %v1019_v3 }
 0x275   : > { %v2926_v46 = vsub.f32 %v1010_v56, %v1053_v59  ;;  %v2939_v17 = vsub.f32 %v2884_v54, %v1048_v11 }
 0x277   : > { %v1064_v54 = vmul.f32 %v2939_v17, %v2939_v17 }
 0x279   : > { %v1072_v40 = vsel %vm602_vm1, %v1064_v54, 0.0 }
 0x27a   : > { %v1037_v55 = vpop.xlane.xlu2 %1036 }
 0x27b   : > { %v1054_v58 = vmul.f32 %v2912_v44, %v1037_v55 }
 0x27d   : > { %v2922_v62 = vsub.f32 %v1011_v1, %v1054_v58  ;;  %v1069_v1 = vmul.f32 %v2926_v46, %v2926_v46 }
 0x27f   : > { %v1070_v0 = vmul.f32 %v2922_v62, %v2922_v62  ;;  %v1087_v21 = vsel %vm602_vm1, %v1069_v1, 0.0 }
 0x281   : > { %v1090_v4 = vsel %vm602_vm1, %v1070_v0, 0.0 }
 0x282   : > { %v1025_v5 = vpop.xlane.xlu2 %1024  ;;  %1091 = vadd.xlane.f32.xlu0 %v1090_v4  ;;  %v1040_v6 = vpop.xlane.xlu0 %1039 }
 0x283   : > { %v1055_v8 = vmul.f32 %v2912_v44, %v1040_v6  ;;  %v1050_v14 = vmul.f32 %v2912_v44, %v1025_v5 }
 0x285   : > { %v2932_v16 = vsub.f32 %v1012_v13, %v1055_v8  ;;  %v2941_v19 = vsub.f32 %v1007_v12, %v1050_v14  ;;  %v2966_v8 = vld [vmem:[%s2701_s15 + $0x2] ss:$0 sm:$0xff]  ;;  %v2969_v14 = vld [vmem:[%s2701_s15 + $0x3] ss:$0 sm:$0xff] }
 0x287   : > { %v1071_v56 = vmul.f32 %v2932_v16, %v2932_v16  ;;  %v1066_v12 = vmul.f32 %v2941_v19, %v2941_v19 }
 0x289   : > { %v1093_v23 = vsel %vm602_vm1, %v1071_v56, 0.0  ;;  %v1078_v42 = vsel %vm602_vm1, %v1066_v12, 0.0 }
 0x28a   : > { %v1022_v26 = vpop.xlane.xlu2 %1021  ;;  %1088 = vadd.xlane.f32.xlu0 %v1087_v21  ;;  %1094 = vadd.xlane.f32.xlu1 %v1093_v23  ;;  %v1028_v13 = vpop.xlane.xlu0 %1027 }
 0x28b   : > { %v1051_v27 = vmul.f32 %v2912_v44, %v1028_v13  ;;  %v1049_v28 = vmul.f32 %v2912_v44, %v1022_v26 }
 0x28d   : > { %v2947_v31 = vsub.f32 %v1008_v25, %v1051_v27  ;;  %v2955_v38 = vsub.f32 %v1006_v24, %v1049_v28 }
 0x28f   : > { %v1067_v34 = vmul.f32 %v2947_v31, %v2947_v31  ;;  %v1065_v25 = vmul.f32 %v2955_v38, %v2955_v38 }
 0x291   : > { %v1081_v45 = vsel %vm602_vm1, %v1067_v34, 0.0  ;;  %v1075_v47 = vsel %vm602_vm1, %v1065_v25, 0.0 }
 0x292   : > { %1073 = vadd.xlane.f32.xlu0 %v1072_v40  ;;  %1079 = vadd.xlane.f32.xlu1 %v1078_v42 }
 0x293   : > { %1082 = vadd.xlane.f32.xlu2 %v1081_v45 }
 0x29a   : > { %1076 = vadd.xlane.f32.xlu1 %v1075_v47 }
 0x2e5   : > { %v1086_v49 = vpop.xlane.xlu2 %1085 }
 0x2e6   : > { %v1100_v24 = vmul.f32 %v1086_v49, %v2912_v44 }
 0x2e8   : > { %v1108_v51 = vadd.f32 1e-05, %v1100_v24 }
 0x2ea   : > { %2343 = vrsqrt.f32 %v1108_v51  ;;  %vm1158_vm5 = vweird.f32 %v1108_v51 }
 0x2f0   : > { %v2344_v53 = vpop.eup %2343 }
 0x2f1   : > { %v1153_v55 = vmul.f32 %v2344_v53, %v1108_v51  ;;  %vm1159_vm4 = vweird.f32 %v2344_v53 }
 0x2f2   : > { %vm1160_vm6 = vmor %vm1158_vm5, %vm1159_vm4 }
 0x2f3   : > { %v1154_v58 = vmul.f32 %v2344_v53, %v1153_v55 }
 0x2f5   : > { %v1155_v59 = vmul.f32 0.5, %v1154_v58  ;;  %v1092_v0 = vpop.xlane.xlu0 %1091 }
 0x2f6   : > { %v1102_v3 = vmul.f32 %v1092_v0, %v2912_v44 }
 0x2f7   : > { %v1156_v4 = vsub.f32 1.5, %v1155_v59 }
 0x2f8   : > { %v1110_v5 = vadd.f32 1e-05, %v1102_v3 }
 0x2f9   : > { %v1157_v6 = vmul.f32 %v2344_v53, %v1156_v4 }
 0x2fa   : > { %2345 = vrsqrt.f32 %v1110_v5  ;;  %vm1178_vm8 = vweird.f32 %v1110_v5 }
 0x2fb   : > { %v1161_v11 = vsel %vm1160_vm6, %v2344_v53, %v1157_v6 }
 0x2fc   : > { %v1196_v1 = vmul.f32 %v1161_v11, %v2915_v48 }
 0x2fd   : > { %v1095_v56 = vpop.xlane.xlu1 %1094  ;;  %v1089_v21 = vpop.xlane.xlu0 %1088 }
 0x2fe   : > { %v1207_v23 = vmul.f32 %v2966_v8, %v1196_v1  ;;  %v1103_v26 = vmul.f32 %v1095_v56, %v2912_v44  ;;  %v1101_v13 = vmul.f32 %v1089_v21, %v2912_v44 }
 0x300   : > { %v2346_v27 = vpop.eup %2345  ;;  %v1218_v28 = vadd.f32 %v2969_v14, %v1207_v23  ;;  %v1111_v54 = vadd.f32 1e-05, %v1103_v26  ;;  %v2976_v12 = vadd.f32 1e-05, %v1101_v13 }
 0x301   : > { %v1173_v34 = vmul.f32 %v2346_v27, %v1110_v5  ;;  %vm1179_vm7 = vweird.f32 %v2346_v27 }
 0x302   : > { %v1226_v40 = vmax.f32 %v1218_v28, 0.0  ;;  %2347 = vrsqrt.f32 %v1111_v54  ;;  %vm1180_vm9 = vmor %vm1178_vm8, %vm1179_vm7  ;;  %vm1188_vm10 = vweird.f32 %v1111_v54  ;;  %vm1168_vm12 = vweird.f32 %v2976_v12 }
 0x303   : > { %v1174_v42 = vmul.f32 %v2346_v27, %v1173_v34  ;;  %2349 = vrsqrt.f32 %v2976_v12 }
 0x304   : > { %v1234_v48 = vadd.f32 %v1226_v40, %v2804_v15 }
 0x305   : > { %v1175_v45 = vmul.f32 0.5, %v1174_v42  ;;  %v1080_v25 = vpop.xlane.xlu1 %1079  ;;  %v1074_v47 = vpop.xlane.xlu0 %1073 }
 0x306   : > { %v2167_v49 = vmul.f32 -1.442695, %v1234_v48  ;;  %1633 = vst.msk [vmem:[#allocation3 + $0x20] sm:$0xff] %vm602_vm1, %v1234_v48  ;;  %v1098_v24 = vmul.f32 %v1080_v25, %v2912_v44  ;;  %v1083_v51 = vpop.xlane.xlu2 %1082  ;;  %v1096_v53 = vmul.f32 %v1074_v47, %v2912_v44 }
 0x307   : > { %v1176_v55 = vsub.f32 1.5, %v1175_v45  ;;  %v1099_v58 = vmul.f32 %v1083_v51, %v2912_v44 }
 0x308   : > { %v2348_v59 = vpop.eup %2347  ;;  %v2984_v0 = vadd.f32 1e-05, %v1098_v24  ;;  %v2986_v3 = vadd.f32 1e-05, %v1096_v53  ;;  %2351 = vpow2.f32 %v2167_v49 }
 0x309   : > { %v2350_v15 = vpop.eup %2349  ;;  %v1177_v4 = vmul.f32 %v2346_v27, %v1176_v55  ;;  %v1183_v6 = vmul.f32 %v2348_v59, %v1111_v54  ;;  %v2988_v11 = vadd.f32 1e-05, %v1099_v58  ;;  %vm1189_vm11 = vweird.f32 %v2348_v59 }
 0x30a   : > { %v1163_v1 = vmul.f32 %v2350_v15, %v2976_v12  ;;  %2353 = vrsqrt.f32 %v2984_v0  ;;  %vm1169_vm13 = vweird.f32 %v2350_v15  ;;  %vm1190_vm14 = vmor %vm1188_vm10, %vm1189_vm11  ;;  %vm1138_vm15 = vweird.f32 %v2984_v0 }
 0x30b   : > { %v1181_v56 = vsel %vm1180_vm9, %v2346_v27, %v1177_v4  ;;  %v1184_v21 = vmul.f32 %v2348_v59, %v1183_v6  ;;  %2355 = vrsqrt.f32 %v2988_v11  ;;  %vm1170_vm0 = vmor %vm1168_vm12, %vm1169_vm13  ;;  %vm1148_vm2 = vweird.f32 %v2988_v11 }
 0x30c   : > { %v1198_v23 = vmul.f32 %v1181_v56, %v2922_v62  ;;  %v1164_v26 = vmul.f32 %v2350_v15, %v1163_v1  ;;  %2357 = vrsqrt.f32 %v2986_v3  ;;  %vm1118_vm4 = vweird.f32 %v2986_v3 }
 0x30d   : > { %v1185_v13 = vmul.f32 0.5, %v1184_v21  ;;  %v1077_v28 = vpop.xlane.xlu1 %1076 }
 0x30e   : > { %v2352_v5 = vpop.eup %2351  ;;  %v1209_v34 = vmul.f32 %v2966_v8, %v1198_v23  ;;  %v1165_v40 = vmul.f32 0.5, %v1164_v26  ;;  %v1097_v42 = vmul.f32 %v1077_v28, %v2912_v44 }
 0x30f   : > { %v1186_v48 = vsub.f32 1.5, %v1185_v13  ;;  %v2997_v27 = vadd.f32 1.0, %v2352_v5 }
 0x310   : > { %v2354_v45 = vpop.eup %2353  ;;  %v1220_v25 = vadd.f32 %v2969_v14, %v1209_v34  ;;  %v1166_v62 = vsub.f32 1.5, %v1165_v40  ;;  %v3002_v51 = vadd.f32 1e-05, %v1097_v42 }
 0x311   : > { %v2356_v47 = vpop.eup %2355  ;;  %v1187_v49 = vmul.f32 %v2348_v59, %v1186_v48  ;;  %v1133_v24 = vmul.f32 %v2354_v45, %v2984_v0  ;;  %2359 = vrcp.f32 %v2997_v27  ;;  %vm1139_vm3 = vweird.f32 %v2354_v45 }
 0x312   : > { %v2358_v53 = vpop.eup %2357  ;;  %v1228_v55 = vmax.f32 %v1220_v25, 0.0  ;;  %v1167_v58 = vmul.f32 %v2350_v15, %v1166_v62  ;;  %v1143_v4 = vmul.f32 %v2356_v47, %v2988_v11  ;;  %2361 = vrsqrt.f32 %v3002_v51  ;;  %vm1140_vm7 = vmor %vm1138_vm15, %vm1139_vm3 }
 0x313   : > { %v1191_v6 = vsel %vm1190_vm14, %v2348_v59, %v1187_v49  ;;  %v1134_v12 = vmul.f32 %v2354_v45, %v1133_v24  ;;  %v1113_v1 = vmul.f32 %v2358_v53, %v2986_v3  ;;  %vm1149_vm5 = vweird.f32 %v2356_v47 }
 0x314   : > { %v1236_v56 = vadd.f32 %v1228_v55, %v2820_v20  ;;  %v1199_v21 = vmul.f32 %v1191_v6, %v2932_v16  ;;  %v1171_v23 = vsel %vm1170_vm0, %v2350_v15, %v1167_v58  ;;  %v1144_v26 = vmul.f32 %v2356_v47, %v1143_v4  ;;  %vm1150_vm10 = vmor %vm1148_vm2, %vm1149_vm5 }
 0x315   : > { %v1197_v54 = vmul.f32 %v1171_v23, %v2926_v46  ;;  %v1135_v13 = vmul.f32 0.5, %v1134_v12  ;;  %v1114_v28 = vmul.f32 %v2358_v53, %v1113_v1  ;;  %vm1119_vm6 = vweird.f32 %v2358_v53 }
 0x316   : > { %1635 = vst.msk [vmem:[#allocation3 + $0x30] sm:$0xff] %vm602_vm1, %v1236_v56  ;;  %v1210_v59 = vmul.f32 %v2966_v8, %v1199_v21  ;;  %v1145_v5 = vmul.f32 0.5, %v1144_v26  ;;  %v2169_v48 = vmul.f32 -1.442695, %v1236_v56  ;;  %vm1335_vm8 = vweird.f32 %v2997_v27  ;;  %vm1120_vm11 = vmor %vm1118_vm4, %vm1119_vm6 }
 0x317   : > { %v3017_v34 = vpop.eup %2359  ;;  %v1208_v20 = vmul.f32 %v2966_v8, %v1197_v54  ;;  %v1136_v16 = vsub.f32 1.5, %v1135_v13  ;;  %v1115_v15 = vmul.f32 0.5, %v1114_v28  ;;  %vm1128_vm12 = vweird.f32 %v3002_v51 }
 0x318   : > { %v1221_v46 = vadd.f32 %v2969_v14, %v1210_v59  ;;  %v1146_v40 = vsub.f32 1.5, %v1145_v5  ;;  %v1331_v42 = vmul.f32 %v3017_v34, %v2997_v27  ;;  %vm1336_vm9 = vweird.f32 %v3017_v34  ;;  %v2362_v58 = vpop.eup %2361 }
 0x319   : > { %v1219_v25 = vadd.f32 %v2969_v14, %v1208_v20  ;;  %v1137_v62 = vmul.f32 %v2354_v45, %v1136_v16  ;;  %v1116_v49 = vsub.f32 1.5, %v1115_v15  ;;  %v1123_v23 = vmul.f32 %v2362_v58, %v3002_v51  ;;  %vm1337_vm14 = vmor %vm1335_vm8, %vm1336_vm9 }
 0x31a   : > { %v1229_v24 = vmax.f32 %v1221_v46, 0.0  ;;  %v1147_v55 = vmul.f32 %v2356_v47, %v1146_v40  ;;  %v1332_v1 = vsub.f32 1.0, %v1331_v42  ;;  %v1341_v54 = vand.u32 2147483648, %v2997_v27 }
 0x31b   : > { %v1227_v4 = vmax.f32 %v1219_v25, 0.0  ;;  %v1141_v6 = vsel %vm1140_vm7, %v2354_v45, %v1137_v62  ;;  %v1117_v12 = vmul.f32 %v2358_v53, %v1116_v49  ;;  %v1124_v3 = vmul.f32 %v2362_v58, %v1123_v23 }
 0x31c   : > { %v1237_v56 = vadd.f32 %v1229_v24, %v2828_v22  ;;  %v1194_v21 = vmul.f32 %v1141_v6, %v2941_v19  ;;  %v1151_v0 = vsel %vm1150_vm10, %v2356_v47, %v1147_v55  ;;  %2363 = vpow2.f32 %v2169_v48 }
 0x31d   : > { %v1235_v45 = vadd.f32 %v1227_v4, %v2812_v18  ;;  %v1195_v11 = vmul.f32 %v1151_v0, %v2947_v31  ;;  %v1121_v26 = vsel %vm1120_vm11, %v2358_v53, %v1117_v12  ;;  %v1333_v18 = vmul.f32 %v3017_v34, %v1332_v1 }
 0x31e   : > { %v2170_v13 = vmul.f32 -1.442695, %v1237_v56  ;;  %1636 = vst.msk [vmem:[#allocation3 + $0x38] sm:$0xff] %vm602_vm1, %v1237_v56  ;;  %v1205_v22 = vmul.f32 %v2966_v8, %v1194_v21  ;;  %v1192_v19 = vmul.f32 %v1121_v26, %v2939_v17  ;;  %v1339_v31 = vand.u32 2147483647, %v2997_v27 }
 0x31f   : > { %v2168_v47 = vmul.f32 -1.442695, %v1235_v45  ;;  %1634 = vst.msk [vmem:[#allocation3 + $0x28] sm:$0xff] %vm602_vm1, %v1235_v45  ;;  %v1206_v28 = vmul.f32 %v2966_v8, %v1195_v11  ;;  %v1125_v5 = vmul.f32 0.5, %v1124_v3  ;;  %vm1129_vm13 = vweird.f32 %v2362_v58 }
 0x320   : > { %v1216_v53 = vadd.f32 %v2969_v14, %v1205_v22  ;;  %v1203_v59 = vmul.f32 %v2966_v8, %v1192_v19  ;;  %v1334_v17 = vadd.f32 %v3017_v34, %v1333_v18  ;;  %2365 = vpow2.f32 %v2170_v13  ;;  %vm1130_vm0 = vmor %vm1128_vm12, %vm1129_vm13 }
 0x321   : > { %v1217_v20 = vadd.f32 %v2969_v14, %v1206_v28  ;;  %v1126_v46 = vsub.f32 1.5, %v1125_v5  ;;  %v1342_v40 = vor.u32 1.1754944e-38, %v1341_v54  ;;  %vm1340_vm15 = vcmp.eq.f32.partialorder %v1339_v31, 8.507059e+37 }
 0x322   : > { %v1224_v16 = vmax.f32 %v1216_v53, 0.0  ;;  %v1214_v15 = vadd.f32 %v2969_v14, %v1203_v59  ;;  %v1338_v25 = vsel %vm1337_vm14, %v3017_v34, %v1334_v17  ;;  %2367 = vpow2.f32 %v2168_v47  ;;  %v2364_v27 = vpop.eup %2363 }
 0x323   : > { %v1225_v42 = vmax.f32 %v1217_v20, 0.0  ;;  %v1127_v49 = vmul.f32 %v2362_v58, %v1126_v46  ;;  %v1343_v24 = vsel %vm1340_vm15, %v1342_v40, %v1338_v25 }
 0x324   : > { %v1232_v48 = vadd.f32 %v1224_v16, %v2786_v2  ;;  %v1222_v62 = vmax.f32 %v1214_v15, 0.0  ;;  %1406 = vrot.lane.b32.xlu1 %v1343_v24, %s2536_s30 }
 0x325   : > { %v1233_v55 = vadd.f32 %v1225_v42, %v2792_v9  ;;  %v1131_v6 = vsel %vm1130_vm0, %v2362_v58, %v1127_v49  ;;  %v1268_v9 = vadd.f32 1.0, %v2364_v27 }
 0x326   : > { %v2165_v4 = vmul.f32 -1.442695, %v1232_v48  ;;  %1631 = vst.msk [vmem:[#allocation3 + $0x10] sm:$0xff] %vm602_vm1, %v1232_v48  ;;  %v1230_v34 = vadd.f32 %v1222_v62, %v2774_v57  ;;  %v2366_v12 = vpop.eup %2365  ;;  %v1193_v1 = vmul.f32 %v1131_v6, %v2955_v38 }
 0x327   : > { %v2166_v2 = vmul.f32 -1.442695, %v1233_v55  ;;  %1632 = vst.msk [vmem:[#allocation3 + $0x18] sm:$0xff] %vm602_vm1, %v1233_v55  ;;  %v1269_v51 = vadd.f32 1.0, %v2366_v12  ;;  %v1369_v47 = vand.u32 2147483647, %v1268_v9  ;;  %vm1365_vm4 = vweird.f32 %v1268_v9 }
 0x328   : > { %v2163_v56 = vmul.f32 -1.442695, %v1230_v34  ;;  %1629 = vst.msk [vmem:[#allocation3] sm:$0xff] %vm602_vm1, %v1230_v34  ;;  %2369 = vpow2.f32 %v2165_v4  ;;  %v2368_v21 = vpop.eup %2367  ;;  %v1204_v0 = vmul.f32 %v2966_v8, %v1193_v1  ;;  %v1371_v18 = vand.u32 2147483648, %v1268_v9 }
 0x329   : > { %2371 = vrcp.f32 %v1268_v9  ;;  %v3072_v58 = vadd.f32 1.0, %v2368_v21  ;;  %v1386_v5 = vand.u32 2147483648, %v1269_v51  ;;  %v1384_v17 = vand.u32 2147483647, %v1269_v51 }
 0x32a   : > { %2373 = vrcp.f32 %v1269_v51  ;;  %v1215_v57 = vadd.f32 %v2969_v14, %v1204_v0  ;;  %vm1380_vm5 = vweird.f32 %v1269_v51  ;;  %vm1370_vm7 = vcmp.eq.f32.partialorder %v1369_v47, 8.507059e+37 }
 0x32b   : > { %2375 = vpow2.f32 %v2166_v2  ;;  %v1372_v40 = vor.u32 1.1754944e-38, %v1371_v18  ;;  %v1387_v48 = vor.u32 1.1754944e-38, %v1386_v5  ;;  %vm1385_vm9 = vcmp.eq.f32.partialorder %v1384_v17, 8.507059e+37 }
 0x32c   : > { %2377 = vpow2.f32 %v2163_v56  ;;  %v1223_v23 = vmax.f32 %v1215_v57, 0.0  ;;  %v1356_v4 = vand.u32 2147483648, %v3072_v58  ;;  %vm1350_vm13 = vweird.f32 %v3072_v58 }
 0x32d   : > { %2379 = vrcp.f32 %v3072_v58 }
 0x32e   : > { %v2370_v45 = vpop.eup %2369  ;;  %v1231_v11 = vadd.f32 %v1223_v23, %v2779_v61 }
 0x32f   : > { %v2372_v38 = vpop.eup %2371  ;;  %v3076_v26 = vadd.f32 1.0, %v2370_v45  ;;  %v1354_v45 = vand.u32 2147483647, %v3072_v58 }
 0x330   : > { %v2374_v54 = vpop.eup %2373  ;;  %v1361_v13 = vmul.f32 %v2372_v38, %v1268_v9  ;;  %v2164_v22 = vmul.f32 -1.442695, %v1231_v11  ;;  %1630 = vst.msk [vmem:[#allocation3 + $0x8] sm:$0xff] %vm602_vm1, %v1231_v11  ;;  %vm1366_vm2 = vweird.f32 %v2372_v38 }
 0x331   : > { %v2376_v8 = vpop.eup %2375  ;;  %v1376_v14 = vmul.f32 %v2374_v54, %v1269_v51  ;;  %2381 = vrcp.f32 %v3076_v26  ;;  %vm1381_vm3 = vweird.f32 %v2374_v54  ;;  %vm1367_vm6 = vmor %vm1365_vm4, %vm1366_vm2  ;;  %v1309_v56 = vand.u32 2147483647, %v3076_v26 }
 0x332   : > { %v2378_v19 = vpop.eup %2377  ;;  %v1362_v3 = vsub.f32 1.0, %v1361_v13  ;;  %v3080_v28 = vadd.f32 1.0, %v2376_v8  ;;  %2383 = vpow2.f32 %v2164_v22  ;;  %vm1382_vm8 = vmor %vm1380_vm5, %vm1381_vm3  ;;  %v1311_v51 = vand.u32 2147483648, %v3076_v26 }
 0x333   : > { %v1377_v31 = vsub.f32 1.0, %v1376_v14  ;;  %v3082_v61 = vadd.f32 1.0, %v2378_v19  ;;  %v3084_v53 = vpop.eup %2379  ;;  %vm1305_vm12 = vweird.f32 %v3076_v26  ;;  %vm1310_vm2 = vcmp.eq.f32.partialorder %v1309_v56, 8.507059e+37 }
 0x334   : > { %v1363_v59 = vmul.f32 %v2372_v38, %v1362_v3  ;;  %2385 = vrcp.f32 %v3080_v28  ;;  %v1346_v15 = vmul.f32 %v3084_v53, %v3072_v58  ;;  %vm1351_vm10 = vweird.f32 %v3084_v53 }
 0x335   : > { %v1378_v20 = vmul.f32 %v2374_v54, %v1377_v31  ;;  %2387 = vrcp.f32 %v3082_v61  ;;  %v1326_v11 = vand.u32 2147483648, %v3080_v28  ;;  %vm3108_vm14 = vmor %vm1350_vm13, %vm1351_vm10  ;;  %v1357_v19 = vor.u32 1.1754944e-38, %v1356_v4 }
 0x336   : > { %v1364_v16 = vadd.f32 %v2372_v38, %v1363_v59  ;;  %v1347_v49 = vsub.f32 1.0, %v1346_v15  ;;  %vm1320_vm3 = vweird.f32 %v3080_v28  ;;  %vm1355_vm4 = vcmp.eq.f32.partialorder %v1354_v45, 8.507059e+37 }
 0x337   : > { %v2382_v46 = vpop.eup %2381  ;;  %v1379_v42 = vadd.f32 %v2374_v54, %v1378_v20  ;;  %v1327_v59 = vor.u32 1.1754944e-38, %v1326_v11 }
 0x338   : > { %v1368_v25 = vsel %vm1367_vm6, %v2372_v38, %v1364_v16  ;;  %v1301_v62 = vmul.f32 %v2382_v46, %v3076_v26  ;;  %v2384_v24 = vpop.eup %2383  ;;  %v1348_v2 = vmul.f32 %v3084_v53, %v1347_v49  ;;  %vm1306_vm11 = vweird.f32 %v2382_v46 }
 0x339   : > { %v1373_v55 = vsel %vm1370_vm7, %v1372_v40, %v1368_v25  ;;  %v1383_v27 = vsel %vm1382_vm8, %v2374_v54, %v1379_v42  ;;  %v3094_v1 = vadd.f32 1.0, %v2384_v24  ;;  %v1324_v38 = vand.u32 2147483647, %v3080_v28  ;;  %vm1307_vm0 = vmor %vm1305_vm12, %vm1306_vm11 }
 0x33a   : > { %v2386_v34 = vpop.eup %2385  ;;  %1410 = vrot.lane.b32.xlu2 %v1373_v55, %s2536_s30  ;;  %v1388_v6 = vsel %vm1385_vm9, %v1387_v48, %v1383_v27  ;;  %v1302_v12 = vsub.f32 1.0, %v1301_v62  ;;  %v1349_v0 = vadd.f32 %v3084_v53, %v1348_v2  ;;  %v1312_v26 = vor.u32 1.1754944e-38, %v1311_v51 }
 0x33b   : > { %1412 = vrot.lane.b32.xlu0 %v1388_v6, %s2536_s30  ;;  %v1316_v9 = vmul.f32 %v2386_v34, %v3080_v28  ;;  %2389 = vrcp.f32 %v3094_v1  ;;  %v2388_v57 = vpop.eup %2387  ;;  %vm1321_vm15 = vweird.f32 %v2386_v34  ;;  %vm1325_vm6 = vcmp.eq.f32.partialorder %v1324_v38, 8.507059e+37 }
 0x33c   : > { %v1303_v21 = vmul.f32 %v2382_v46, %v1302_v12  ;;  %v1271_v8 = vmul.f32 %v2388_v57, %v3082_v61  ;;  %v1353_v58 = vsel %vm3108_vm14, %v3084_v53, %v1349_v0  ;;  %vm1322_vm5 = vmor %vm1320_vm3, %vm1321_vm15  ;;  %vm1276_vm7 = vweird.f32 %v2388_v57 }
 0x33d   : > { %v1317_v23 = vsub.f32 1.0, %v1316_v9  ;;  %v1358_v5 = vsel %vm1355_vm4, %v1357_v19, %v1353_v58  ;;  %v1281_v28 = vand.u32 2147483648, %v3082_v61  ;;  %vm1275_vm8 = vweird.f32 %v3082_v61 }
 0x33e   : > { %v1304_v54 = vadd.f32 %v2382_v46, %v1303_v21  ;;  %v1272_v3 = vsub.f32 1.0, %v1271_v8  ;;  %v1279_v40 = vand.u32 2147483647, %v3082_v61  ;;  %v1296_v42 = vand.u32 2147483648, %v3094_v1  ;;  %vm1277_vm9 = vmor %vm1275_vm8, %vm1276_vm7 }
 0x33f   : > { %v1318_v22 = vmul.f32 %v2386_v34, %v1317_v23  ;;  %v1294_v48 = vand.u32 2147483647, %v3094_v1  ;;  %v1282_v49 = vor.u32 1.1754944e-38, %v1281_v28  ;;  %vm1290_vm11 = vweird.f32 %v3094_v1 }
 0x340   : > { %v1308_v14 = vsel %vm1307_vm0, %v2382_v46, %v1304_v54  ;;  %v1273_v20 = vmul.f32 %v2388_v57, %v1272_v3  ;;  %vm1280_vm12 = vcmp.eq.f32.partialorder %v1279_v40, 8.507059e+37  ;;  %v1297_v55 = vor.u32 1.1754944e-38, %v1296_v42 }
 0x341   : > { %v1319_v47 = vadd.f32 %v2386_v34, %v1318_v22  ;;  %v1313_v18 = vsel %vm1310_vm2, %v1312_v26, %v1308_v14  ;;  %v2390_v31 = vpop.eup %2389  ;;  %vm1295_vm14 = vcmp.eq.f32.partialorder %v1294_v48, 8.507059e+37  ;;  %vm735_vm15 = vcmask 523264  }
 0x342   : > { %1402 = vrot.lane.b32.xlu2 %v1313_v18, %s2536_s30  ;;  %v1286_v53 = vmul.f32 %v2390_v31, %v3094_v1  ;;  %v1274_v15 = vadd.f32 %v2388_v57, %v1273_v20  ;;  %vm1291_vm10 = vweird.f32 %v2390_v31 }
 0x343   : > { %v1323_v17 = vsel %vm1322_vm5, %v2386_v34, %v1319_v47  ;;  %1408 = vrot.lane.b32.xlu0 %v1358_v5, %s2536_s30  ;;  %vm1292_vm13 = vmor %vm1290_vm11, %vm1291_vm10 }
 0x344   : > { %v1328_v16 = vsel %vm1325_vm6, %v1327_v59, %v1323_v17  ;;  %v1287_v46 = vsub.f32 1.0, %v1286_v53  ;;  %v1278_v62 = vsel %vm1277_vm9, %v2388_v57, %v1274_v15 }
 0x345   : > { %1404 = vrot.lane.b32.xlu1 %v1328_v16, %s2536_s30  ;;  %v1283_v27 = vsel %vm1280_vm12, %v1282_v49, %v1278_v62 }
 0x346   : > { %v1288_v25 = vmul.f32 %v2390_v31, %v1287_v46 }
 0x348   : > { %v1289_v24 = vadd.f32 %v2390_v31, %v1288_v25 }
 0x34a   : > { %v1293_v4 = vsel %vm1292_vm13, %v2390_v31, %v1289_v24 }
 0x34b   : > { %1398 = vrot.lane.b32.xlu0 %v1283_v27, %s2536_s30  ;;  %v1298_v61 = vsel %vm1295_vm14, %v1297_v55, %v1293_v4 }
 0x34c   : > { %1400 = vrot.lane.b32.xlu2 %v1298_v61, %s2536_s30 }
 0x394   : > { %v3130_v34 = vpop.permute.xlu2 %1410 }
 0x395   : > { %v1428_v12 = vmul.f32 %v3130_v34, %v2889_v60  ;;  %v1476_v11 = vmul.f32 %v3130_v34, %v2891_v63 }
 0x396   : > { %v3138_v1 = vpop.permute.xlu1 %1406 }
 0x397   : > { %v1426_v21 = vmul.f32 %v3138_v1, %v2869_v41  ;;  %v1474_v13 = vmul.f32 %v3138_v1, %v2871_v43 }
 0x39c   : > { %v3140_v56 = vpop.permute.xlu2 %1402 }
 0x39d   : > { %v1424_v60 = vmul.f32 %v3140_v56, %v2856_v35 }
 0x3a6   : > { %v3156_v38 = vpop.permute.xlu2 %1400 }
 0x3a7   : > { %v1423_v35 = vmul.f32 %v3156_v38, %v2852_v32  ;;  %v1471_v43 = vmul.f32 %v3156_v38, %v2854_v33 }
 0x3ad   : > { %v3132_v6 = vpop.permute.xlu0 %1412 }
 0x3ae   : > { %v1429_v2 = vmul.f32 %v3132_v6, %v2898_v7  ;;  %v1477_v41 = vmul.f32 %v3132_v6, %v2900_v10 }
 0x3b0   : > { %v2296_v9 = vpack.i.bf16 %v1429_v2, %v1428_v12  ;;  %v2316_v10 = vpack.i.bf16 %v1477_v41, %v1476_v11 }
 0x3b2   : > { %2297 = vrot.lane.b32.xlu1 %v2296_v9, %s2535_s20  ;;  %v2213_v9 = vld [vmem:[%s3361_s5] sm:$0xff] }
 0x3b5   : > { %v3143_v51 = vpop.permute.xlu0 %1408 }
 0x3b6   : > { %v1427_v0 = vmul.f32 %v3143_v51, %v2878_v50 }
 0x3b7   : > { %v3149_v57 = vpop.permute.xlu1 %1404 }
 0x3b8   : > { %v1425_v7 = vmul.f32 %v3149_v57, %v2860_v37  ;;  %v2301_v23 = vpack.i.bf16 %v1427_v0, %v1426_v21  ;;  %v1475_v37 = vmul.f32 %v3143_v51, %v2880_v52  ;;  %v1473_v63 = vmul.f32 %v3149_v57, %v2862_v39 }
 0x3ba   : > { %v2306_v45 = vpack.i.bf16 %v1425_v7, %v1424_v60  ;;  %2302 = vrot.lane.b32.xlu0 %v2301_v23, %s2535_s20  ;;  %v2321_v22 = vpack.i.bf16 %v1475_v37, %v1474_v13  ;;  %v2214_v13 = vld [vmem:[%s3361_s5 + $0x8] sm:$0xff] }
 0x3bc   : > { %2307 = vrot.lane.b32.xlu2 %v2306_v45, %s2535_s20 }
 0x3bd   : > { %v3161_v50 = vpop.permute.xlu0 %1398 }
 0x3be   : > { %v1422_v54 = vmul.f32 %v3161_v50, %v2848_v29  ;;  %v1470_v32 = vmul.f32 %v3161_v50, %v2850_v30  ;;  %v1472_v29 = vmul.f32 %v3140_v56, %v2858_v36 }
 0x3c0   : > { %v2311_v8 = vpack.i.bf16 %v1423_v35, %v1422_v54  ;;  %v2331_v52 = vpack.i.bf16 %v1471_v43, %v1470_v32  ;;  %v2326_v26 = vpack.i.bf16 %v1473_v63, %v1472_v29 }
 0x3c2   : > { %2317 = vrot.lane.b32.xlu0 %v2316_v10, %s2535_s20  ;;  %2312 = vrot.lane.b32.xlu1 %v2311_v8, %s2535_s20 }
 0x3c4   : > { %2322 = vrot.lane.b32.xlu2 %v2321_v22, %s2535_s20 }
 0x3ca   : > { %2332 = vrot.lane.b32.xlu0 %v2331_v52, %s2535_s20  ;;  %2327 = vrot.lane.b32.xlu1 %v2326_v26, %s2535_s20 }
 0x416   : > { %v2308_v36 = vpop.permute.xlu2 %2307 }
 0x417   : > { %v2310_v33 = vunpack.i.h.bf16 %v2308_v36  ;;  %v2309_v18 = vunpack.i.l.bf16 %v2308_v36 }
 0x419   : > { %v1464_v53 = vsel %vm602_vm1, %v2309_v18, %v3140_v56  ;;  %v1465_v16 = vsel %vm602_vm1, %v2310_v33, %v3149_v57 }
 0x41a   : > { %v1527_v40 = vpack.c.bf16 %v1465_v16, %v1464_v53 }
 0x41e   : > { %v2323_v15 = vpop.permute.xlu2 %2322 }
 0x41f   : > { %v2325_v49 = vunpack.i.h.bf16 %v2323_v15  ;;  %v2324_v24 = vunpack.i.l.bf16 %v2323_v15 }
 0x424   : > { %v2298_v58 = vpop.permute.xlu1 %2297 }
 0x425   : > { %v2300_v14 = vunpack.i.h.bf16 %v2298_v58  ;;  %v2299_v39 = vunpack.i.l.bf16 %v2298_v58 }
 0x427   : > { %v1468_v30 = vsel %vm602_vm1, %v2299_v39, %v3130_v34  ;;  %v1469_v19 = vsel %vm602_vm1, %v2300_v14, %v3132_v6 }
 0x428   : > { %v1529_v3 = vpack.c.bf16 %v1469_v19, %v1468_v30 }
 0x42a   : > { %1551 = vmatpush.bf16.msrb.mxu1 %v1529_v3 }
 0x42c   : > { %v2303_v47 = vpop.permute.xlu0 %2302 }
 0x42d   : > { %v2305_v31 = vunpack.i.h.bf16 %v2303_v47  ;;  %v2304_v59 = vunpack.i.l.bf16 %v2303_v47 }
 0x42f   : > { %v1466_v5 = vsel %vm602_vm1, %v2304_v59, %v3138_v1  ;;  %v1467_v20 = vsel %vm602_vm1, %v2305_v31, %v3143_v51 }
 0x430   : > { %v1528_v17 = vpack.c.bf16 %v1467_v20, %v1466_v5 }
 0x432   : > { %1552 = vmatpush.bf16.msrb.mxu1 %v1528_v17 }
 0x434   : > { %v2313_v28 = vpop.permute.xlu1 %2312  ;;  %v2318_v46 = vpop.permute.xlu0 %2317 }
 0x435   : > { %v2315_v42 = vunpack.i.h.bf16 %v2313_v28  ;;  %v2314_v25 = vunpack.i.l.bf16 %v2313_v28  ;;  %v2320_v48 = vunpack.i.h.bf16 %v2318_v46  ;;  %v2319_v62 = vunpack.i.l.bf16 %v2318_v46 }
 0x436   : > { %1553 = vmatpush.bf16.msrb.mxu1 %v1527_v40 }
 0x437   : > { %v1517_v55 = vsel %vm602_vm1, %v2320_v48, %v3132_v6  ;;  %v1516_v27 = vsel %vm602_vm1, %v2319_v62, %v3130_v34  ;;  %v1462_v4 = vsel %vm602_vm1, %v2314_v25, %v3161_v50  ;;  %v1463_v61 = vsel %vm602_vm1, %v2315_v42, %v3156_v38 }
 0x438   : > { %v1585_v12 = vpack.c.bf16 %v1517_v55, %v1516_v27  ;;  %v1526_v2 = vpack.c.bf16 %v1463_v61, %v1462_v4  ;;  %v1514_v6 = vsel %vm602_vm1, %v2324_v24, %v3138_v1  ;;  %v1515_v34 = vsel %vm602_vm1, %v2325_v49, %v3143_v51 }
 0x439   : > { %v1584_v23 = vpack.c.bf16 %v1515_v34, %v1514_v6 }
 0x43a   : > { %1554 = vmatpush.bf16.msrb.mxu1 %v1526_v2 }
 0x43c   : > { %v2328_v21 = vpop.permute.xlu1 %2327  ;;  %v2333_v0 = vpop.permute.xlu0 %2332 }
 0x43d   : > { %v2330_v60 = vunpack.i.h.bf16 %v2328_v21  ;;  %v2329_v7 = vunpack.i.l.bf16 %v2328_v21  ;;  %2179 = vmatmul.msk.bf16.vlgmr.msrb.gmra.mxu1 %vm735_vm15, %v2213_v9  ;;  %v2335_v45 = vunpack.i.h.bf16 %v2333_v0  ;;  %v2334_v41 = vunpack.i.l.bf16 %v2333_v0 }
 0x43e   : > { %1606 = vmatpush.bf16.msra.mxu1 %v1585_v12 }
 0x43f   : > { %v1512_v11 = vsel %vm602_vm1, %v2329_v7, %v3140_v56  ;;  %v1513_v1 = vsel %vm602_vm1, %v2330_v60, %v3149_v57  ;;  %v1510_v51 = vsel %vm602_vm1, %v2334_v41, %v3161_v50  ;;  %v1511_v37 = vsel %vm602_vm1, %v2335_v45, %v3156_v38  ;;  %v2215_v57 = vld [vmem:[%s3360_s4] sm:$0xff]  ;;  %v2216_v38 = vld [vmem:[%s3360_s4 + $0x8] sm:$0xff] }
 0x440   : > { %v1583_v35 = vpack.c.bf16 %v1513_v1, %v1512_v11  ;;  %v1582_v54 = vpack.c.bf16 %v1511_v37, %v1510_v51  ;;  %v2538_v56 = vmov 0.0   ;;  %v1706_v11 = vld [vmem:[#allocation4 + $0x10] sm:$0xff] }
 0x441   : > { %736 = vst.msk [vmem:[#allocation7] sm:$0xff] %vm735_vm15, %v2538_v56 }
 0x442   : > { %1607 = vmatpush.bf16.msra.mxu1 %v1584_v23  ;;  %737 = vst.msk [vmem:[#allocation7 + $0x8] sm:$0xff] %vm735_vm15, %v2538_v56 }
 0x443   : > { %738 = vst.msk [vmem:[#allocation7 + $0x10] sm:$0xff] %vm735_vm15, %v2538_v56 }
 0x444   : > { %739 = vst.msk [vmem:[#allocation7 + $0x18] sm:$0xff] %vm735_vm15, %v2538_v56 }
 0x445   : > { %740 = vst.msk [vmem:[#allocation8] sm:$0xff] %vm735_vm15, %v2538_v56 }
 0x446   : > { %1608 = vmatpush.bf16.msra.mxu1 %v1583_v35  ;;  %741 = vst.msk [vmem:[#allocation8 + $0x8] sm:$0xff] %vm735_vm15, %v2538_v56 }
 0x447   : > { %742 = vst.msk [vmem:[#allocation8 + $0x10] sm:$0xff] %vm735_vm15, %v2538_v56 }
 0x448   : > { %743 = vst.msk [vmem:[#allocation8 + $0x18] sm:$0xff] %vm735_vm15, %v2538_v56  ;;  %v1518_v50 = vld [vmem:[#allocation7] sm:$0xff] }
 0x449   : > { %v1519_v22 = vld [vmem:[#allocation7 + $0x8] sm:$0xff]  ;;  %v1704_v56 = vld [vmem:[#allocation4] sm:$0xff] }
 0x44a   : > { %1609 = vmatpush.bf16.msra.mxu1 %v1582_v54  ;;  %v1520_v52 = vld [vmem:[#allocation7 + $0x10] sm:$0xff] }
 0x44b   : > { %v1521_v19 = vld [vmem:[#allocation7 + $0x18] sm:$0xff] }
 0x44c   : > { %v1574_v31 = vld [vmem:[#allocation8] sm:$0xff] }
 0x44d   : > { %2180 = vmatmul.msk.bf16.gmra.mxu1 %vm735_vm15, %v2214_v13  ;;  %v1575_v16 = vld [vmem:[#allocation8 + $0x8] sm:$0xff] }
 0x44e   : > { %v1576_v25 = vld [vmem:[#allocation8 + $0x10] sm:$0xff] }
 0x44f   : > { %v1577_v27 = vld [vmem:[#allocation8 + $0x18] sm:$0xff] }
 0x45d   : > { %2189 = vmatmul.msk.bf16.vlgmr.msra.gmra.mxu1 %vm735_vm15, %v2215_v57 }
 0x46d   : > { %2190 = vmatmul.msk.bf16.gmra.mxu1 %vm735_vm15, %v2216_v38 }
 0x4ba   : > { %v1556_v10 = vpop.f32.mrf.mxu1 }
 0x4bb   : > { %v1566_v8 = vadd.f32 %v1556_v10, %v1518_v50 }
 0x4bd   : > { %1570 = vst.msk [vmem:[#allocation7] sm:$0xff] %vm735_vm15, %v1566_v8 }
 0x4c2   : > { %v1558_v63 = vpop.f32.mrf.mxu1 }
 0x4c3   : > { %v1567_v32 = vadd.f32 %v1558_v63, %v1519_v22  ;;  %v1705_v63 = vld [vmem:[#allocation4 + $0x8] sm:$0xff] }
 0x4c4   : > { %v3243_v29 = vld [vmem:[#allocation7] sm:$0xff] }
 0x4c5   : > { %1571 = vst.msk [vmem:[#allocation7 + $0x8] sm:$0xff] %vm735_vm15, %v1567_v32  ;;  %v1648_v43 = vadd.f32 1e-06, %v3243_v29 }
 0x4c7   : > { %2391 = vrcp.f32 %v1648_v43 }
 0x4ca   : > { %v1561_v26 = vpop.f32.mrf.mxu1 }
 0x4cb   : > { %v1568_v58 = vadd.f32 %v1561_v26, %v1520_v52 }
 0x4cc   : > { %v3247_v14 = vld [vmem:[#allocation7 + $0x8] sm:$0xff] }
 0x4cd   : > { %v2392_v39 = vpop.eup %2391  ;;  %1572 = vst.msk [vmem:[#allocation7 + $0x10] sm:$0xff] %vm735_vm15, %v1568_v58  ;;  %v1649_v30 = vadd.f32 1e-06, %v3247_v14 }
 0x4ce   : > { %1660 = vrot.lane.b32.xlu2 %v2392_v39, %s2535_s20  ;;  %v1707_v39 = vld [vmem:[#allocation4 + $0x18] sm:$0xff] }
 0x4cf   : > { %2393 = vrcp.f32 %v1649_v30 }
 0x4d2   : > { %v1563_v3 = vpop.f32.mrf.mxu1 }
 0x4d3   : > { %v1569_v36 = vadd.f32 %v1563_v3, %v1521_v19 }
 0x4d4   : > { %v1642_v47 = vld [vmem:[#allocation7 + $0x10] sm:$0xff] }
 0x4d5   : > { %v2394_v33 = vpop.eup %2393  ;;  %1573 = vst.msk [vmem:[#allocation7 + $0x18] sm:$0xff] %vm735_vm15, %v1569_v36  ;;  %v1650_v18 = vadd.f32 1e-06, %v1642_v47 }
 0x4d6   : > { %1662 = vrot.lane.b32.xlu1 %v2394_v33, %s2535_s20 }
 0x4d7   : > { %2395 = vrcp.f32 %v1650_v18 }
 0x4da   : > { %v1611_v59 = vpop.f32.mrf.mxu1 }
 0x4db   : > { %v1621_v5 = vadd.f32 %v1611_v59, %v1574_v31 }
 0x4dc   : > { %v3254_v20 = vld [vmem:[#allocation7 + $0x18] sm:$0xff] }
 0x4dd   : > { %v2396_v17 = vpop.eup %2395  ;;  %1625 = vst.msk [vmem:[#allocation8] sm:$0xff] %vm735_vm15, %v1621_v5  ;;  %v1651_v53 = vadd.f32 1e-06, %v3254_v20 }
 0x4de   : > { %1664 = vrot.lane.b32.xlu0 %v2396_v17, %s2535_s20 }
 0x4df   : > { %2397 = vrcp.f32 %v1651_v53 }
 0x4e2   : > { %v1613_v15 = vpop.f32.mrf.mxu1 }
 0x4e3   : > { %v1622_v28 = vadd.f32 %v1613_v15, %v1575_v16 }
 0x4e4   : > { %v1644_v46 = vld [vmem:[#allocation8] sm:$0xff] }
 0x4e5   : > { %v2398_v40 = vpop.eup %2397  ;;  %1626 = vst.msk [vmem:[#allocation8 + $0x8] sm:$0xff] %vm735_vm15, %v1622_v28  ;;  %v1676_v42 = vadd.f32 1e-06, %v1644_v46 }
 0x4e6   : > { %1666 = vrot.lane.b32.xlu2 %v2398_v40, %s2535_s20 }
 0x4e7   : > { %2399 = vrcp.f32 %v1676_v42 }
 0x4ea   : > { %v1616_v48 = vpop.f32.mrf.mxu1 }
 0x4eb   : > { %v1623_v62 = vadd.f32 %v1616_v48, %v1576_v25 }
 0x4ec   : > { %v1645_v49 = vld [vmem:[#allocation8 + $0x8] sm:$0xff] }
 0x4ed   : > { %v2400_v24 = vpop.eup %2399  ;;  %1627 = vst.msk [vmem:[#allocation8 + $0x10] sm:$0xff] %vm735_vm15, %v1623_v62  ;;  %v1677_v55 = vadd.f32 1e-06, %v1645_v49 }
 0x4ee   : > { %1688 = vrot.lane.b32.xlu1 %v2400_v24, %s2535_s20 }
 0x4ef   : > { %2401 = vrcp.f32 %v1677_v55 }
 0x4f2   : > { %v1618_v4 = vpop.f32.mrf.mxu1 }
 0x4f3   : > { %v1624_v61 = vadd.f32 %v1618_v4, %v1577_v27 }
 0x4f4   : > { %v1646_v12 = vld [vmem:[#allocation8 + $0x10] sm:$0xff] }
 0x4f5   : > { %v2402_v2 = vpop.eup %2401  ;;  %1628 = vst.msk [vmem:[#allocation8 + $0x18] sm:$0xff] %vm735_vm15, %v1624_v61  ;;  %v1678_v9 = vadd.f32 1e-06, %v1646_v12 }
 0x4f6   : > { %1690 = vrot.lane.b32.xlu0 %v2402_v2, %s2535_s20 }
 0x4f7   : > { %2403 = vrcp.f32 %v1678_v9 }
 0x4fc   : > { %v1647_v6 = vld [vmem:[#allocation8 + $0x18] sm:$0xff] }
 0x4fd   : > { %v2404_v34 = vpop.eup %2403  ;;  %v1679_v21 = vadd.f32 1e-06, %v1647_v6 }
 0x4fe   : > { %1692 = vrot.lane.b32.xlu2 %v2404_v34, %s2535_s20 }
 0x4ff   : > { %2405 = vrcp.f32 %v1679_v21 }
 0x505   : > { %v2406_v0 = vpop.eup %2405 }
 0x506   : > { %1694 = vrot.lane.b32.xlu1 %v2406_v0, %s2535_s20 }
 0x528   : > { %v1661_v60 = vpop.permute.xlu2 %1660 }
 0x529   : > { %v1672_v54 = vmul.f32 %v1661_v60, %v3243_v29 }
 0x52b   : > { %v1708_v38 = vadd.f32 %v1704_v56, %v1672_v54 }
 0x540   : > { %v1667_v7 = vpop.permute.xlu2 %1666 }
 0x541   : > { %v1675_v58 = vmul.f32 %v1667_v7, %v3254_v20 }
 0x543   : > { %v1711_v19 = vadd.f32 %v1707_v39, %v1675_v58 }
 0x548   : > { %v1663_v41 = vpop.permute.xlu1 %1662 }
 0x549   : > { %v1673_v8 = vmul.f32 %v1663_v41, %v3247_v14 }
 0x54b   : > { %v1709_v43 = vadd.f32 %v1705_v63, %v1673_v8 }
 0x550   : > { %v1665_v23 = vpop.permute.xlu0 %1664 }
 0x551   : > { %v1674_v45 = vmul.f32 %v1665_v23, %v1642_v47 }
 0x553   : > { %v1710_v35 = vadd.f32 %v1706_v11, %v1674_v45 }
 0x558   : > { %v1693_v1 = vpop.permute.xlu2 %1692 }
 0x559   : > { %v1702_v51 = vmul.f32 %v1693_v1, %v1646_v12  ;;  %v2339_v1 = vld [vmem:[%s2701_s15] ss:$0 sm:$0xff] }
 0x55b   : > { %v1714_v37 = vadd.f32 %v1710_v35, %v1702_v51 }
 0x55d   : > { %v1725_v13 = vsel %vm602_vm1, %v1714_v37, 0.0 }
 0x55e   : > { %1726 = vadd.xlane.f32.xlu1 %v1725_v13 }
 0x560   : > { %v1689_v57 = vpop.permute.xlu1 %1688 }
 0x561   : > { %v1700_v50 = vmul.f32 %v1689_v57, %v1644_v46 }
 0x563   : > { %v1712_v10 = vadd.f32 %v1708_v38, %v1700_v50 }
 0x565   : > { %v1719_v22 = vsel %vm602_vm1, %v1712_v10, 0.0 }
 0x566   : > { %1720 = vadd.xlane.f32.xlu0 %v1719_v22 }
 0x568   : > { %v1691_v32 = vpop.permute.xlu0 %1690 }
 0x569   : > { %v1701_v52 = vmul.f32 %v1691_v32, %v1645_v49 }
 0x56b   : > { %v1713_v26 = vadd.f32 %v1709_v43, %v1701_v52 }
 0x56d   : > { %v1722_v29 = vsel %vm602_vm1, %v1713_v26, 0.0 }
 0x56e   : > { %1723 = vadd.xlane.f32.xlu2 %v1722_v29 }
 0x578   : > { %v1695_v30 = vpop.permute.xlu1 %1694 }
 0x579   : > { %v1703_v3 = vmul.f32 %v1695_v30, %v1647_v6 }
 0x57b   : > { %v1715_v36 = vadd.f32 %v1711_v19, %v1703_v3 }
 0x57d   : > { %v1728_v14 = vsel %vm602_vm1, %v1715_v36, 0.0 }
 0x57e   : > { %1729 = vadd.xlane.f32.xlu0 %v1728_v14  ;;  %v1825_v14 = vld [vmem:[#allocation2] sm:$0xff] }
 0x5d1   : > { %v1727_v47 = vpop.xlane.xlu1 %1726 }
 0x5d2   : > { %v1733_v33 = vmul.f32 %v1727_v47, %v2912_v44 }
 0x5d4   : > { %v1737_v18 = vsub.f32 %v1714_v37, %v1733_v33  ;;  %v2340_v37 = vld [vmem:[%s2701_s15 + $0x1] ss:$0 sm:$0xff] }
 0x5d6   : > { %v1741_v31 = vmul.f32 %v1737_v18, %v1737_v18 }
 0x5d8   : > { %v1749_v59 = vsel %vm602_vm1, %v1741_v31, 0.0 }
 0x5d9   : > { %1750 = vadd.xlane.f32.xlu0 %v1749_v59  ;;  %v1721_v5 = vpop.xlane.xlu0 %1720 }
 0x5da   : > { %v1731_v17 = vmul.f32 %v1721_v5, %v2912_v44 }
 0x5dc   : > { %v1735_v20 = vsub.f32 %v1712_v10, %v1731_v17  ;;  %v1827_v10 = vld [vmem:[#allocation2 + $0x10] sm:$0xff] }
 0x5de   : > { %v1739_v53 = vmul.f32 %v1735_v20, %v1735_v20 }
 0x5e0   : > { %v1743_v16 = vsel %vm602_vm1, %v1739_v53, 0.0 }
 0x5e1   : > { %v1724_v15 = vpop.xlane.xlu2 %1723  ;;  %1744 = vadd.xlane.f32.xlu2 %v1743_v16 }
 0x5e2   : > { %v1732_v28 = vmul.f32 %v1724_v15, %v2912_v44 }
 0x5e4   : > { %v3279_v46 = vsub.f32 %v1713_v26, %v1732_v28 }
 0x5e6   : > { %v1740_v40 = vmul.f32 %v3279_v46, %v3279_v46 }
 0x5e8   : > { %v1746_v42 = vsel %vm602_vm1, %v1740_v40, 0.0 }
 0x5e9   : > { %1747 = vadd.xlane.f32.xlu1 %v1746_v42 }
 0x5f1   : > { %v1730_v25 = vpop.xlane.xlu0 %1729 }
 0x5f2   : > { %v1734_v48 = vmul.f32 %v1730_v25, %v2912_v44 }
 0x5f4   : > { %v3285_v62 = vsub.f32 %v1715_v36, %v1734_v48 }
 0x5f6   : > { %v1742_v49 = vmul.f32 %v3285_v62, %v3285_v62 }
 0x5f8   : > { %v1752_v24 = vsel %vm602_vm1, %v1742_v49, 0.0 }
 0x5f9   : > { %1753 = vadd.xlane.f32.xlu2 %v1752_v24 }
 0x64c   : > { %v1751_v55 = vpop.xlane.xlu0 %1750 }
 0x64d   : > { %v1757_v27 = vmul.f32 %v1751_v55, %v2912_v44  ;;  %v1828_v55 = vld [vmem:[#allocation2 + $0x18] sm:$0xff] }
 0x64f   : > { %v1761_v4 = vadd.f32 1e-05, %v1757_v27 }
 0x651   : > { %2407 = vrsqrt.f32 %v1761_v4  ;;  %vm1789_vm2 = vweird.f32 %v1761_v4 }
 0x654   : > { %v1745_v61 = vpop.xlane.xlu2 %1744 }
 0x655   : > { %v1755_v12 = vmul.f32 %v1745_v61, %v2912_v44  ;;  %v1856_v61 = vld [vmem:[#allocation3] sm:$0xff] (%p1841_p1) }
 0x656   : > { %1857 = vst [vmem:[%s3386_s13] sm:$0xff] (%p1841_p1), %v1856_v61 }
 0x657   : > { %v2408_v2 = vpop.eup %2407  ;;  %v1759_v9 = vadd.f32 1e-05, %v1755_v12  ;;  %v1858_v12 = vld [vmem:[#allocation3 + $0x8] sm:$0xff] (%p1841_p1) }
 0x658   : > { %v1784_v6 = vmul.f32 %v2408_v2, %v1761_v4  ;;  %vm1790_vm0 = vweird.f32 %v2408_v2  ;;  %1859 = vst [vmem:[%s3386_s13 + $0x8] sm:$0xff] (%p1841_p1), %v1858_v12 }
 0x659   : > { %2409 = vrsqrt.f32 %v1759_v9  ;;  %vm1791_vm3 = vmor %vm1789_vm2, %vm1790_vm0  ;;  %vm1769_vm5 = vweird.f32 %v1759_v9 }
 0x65a   : > { %v1785_v34 = vmul.f32 %v2408_v2, %v1784_v6  ;;  %v1866_v6 = vld [vmem:[#allocation3 + $0x28] sm:$0xff] (%p1841_p1) }
 0x65b   : > { %1867 = vst [vmem:[%s3386_s13 + $0x28] sm:$0xff] (%p1841_p1), %v1866_v6 }
 0x65c   : > { %v1786_v21 = vmul.f32 0.5, %v1785_v34  ;;  %v1748_v0 = vpop.xlane.xlu1 %1747  ;;  %v1868_v34 = vld [vmem:[#allocation3 + $0x30] sm:$0xff] (%p1841_p1) }
 0x65d   : > { %v1756_v60 = vmul.f32 %v1748_v0, %v2912_v44  ;;  %1869 = vst [vmem:[%s3386_s13 + $0x30] sm:$0xff] (%p1841_p1), %v1868_v34 }
 0x65e   : > { %v1787_v7 = vsub.f32 1.5, %v1786_v21  ;;  %v1870_v21 = vld [vmem:[#allocation3 + $0x38] sm:$0xff] (%p1841_p1) }
 0x65f   : > { %v2410_v23 = vpop.eup %2409  ;;  %v1760_v45 = vadd.f32 1e-05, %v1756_v60  ;;  %1871 = vst [vmem:[%s3386_s13 + $0x38] sm:$0xff] (%p1841_p1), %v1870_v21 }
 0x660   : > { %v1788_v41 = vmul.f32 %v2408_v2, %v1787_v7  ;;  %v1764_v11 = vmul.f32 %v2410_v23, %v1759_v9  ;;  %vm1770_vm4 = vweird.f32 %v2410_v23  ;;  %v1864_v9 = vld [vmem:[#allocation3 + $0x20] sm:$0xff] (%p1841_p1) }
 0x661   : > { %2411 = vrsqrt.f32 %v1760_v45  ;;  %vm1771_vm6 = vmor %vm1769_vm5, %vm1770_vm4  ;;  %vm1779_vm8 = vweird.f32 %v1760_v45  ;;  %1865 = vst [vmem:[%s3386_s13 + $0x20] sm:$0xff] (%p1841_p1), %v1864_v9 }
 0x662   : > { %v1792_v35 = vsel %vm1791_vm3, %v2408_v2, %v1788_v41  ;;  %v1765_v51 = vmul.f32 %v2410_v23, %v1764_v11  ;;  %v1860_v2 = vld [vmem:[#allocation3 + $0x10] sm:$0xff] (%p1841_p1) }
 0x663   : > { %v1805_v54 = vmul.f32 %v1792_v35, %v1737_v18  ;;  %1861 = vst [vmem:[%s3386_s13 + $0x10] sm:$0xff] (%p1841_p1), %v1860_v2 }
 0x664   : > { %v1766_v13 = vmul.f32 0.5, %v1765_v51 }
 0x665   : > { %v1812_v56 = vmul.f32 %v2339_v1, %v1805_v54 }
 0x666   : > { %v1767_v57 = vsub.f32 1.5, %v1766_v13 }
 0x667   : > { %v2412_v38 = vpop.eup %2411  ;;  %v1819_v50 = vadd.f32 %v2340_v37, %v1812_v56 }
 0x668   : > { %v1768_v8 = vmul.f32 %v2410_v23, %v1767_v57  ;;  %v1774_v22 = vmul.f32 %v2412_v38, %v1760_v45  ;;  %vm1780_vm7 = vweird.f32 %v2412_v38 }
 0x669   : > { %v1823_v63 = vmax.f32 %v1819_v50, 0.0  ;;  %vm1781_vm9 = vmor %vm1779_vm8, %vm1780_vm7 }
 0x66a   : > { %v1772_v32 = vsel %vm1771_vm6, %v2410_v23, %v1768_v8  ;;  %v1775_v43 = vmul.f32 %v2412_v38, %v1774_v22 }
 0x66b   : > { %v1831_v52 = vadd.f32 %v1827_v10, %v1823_v63  ;;  %v1803_v26 = vmul.f32 %v1772_v32, %v1735_v20  ;;  %v1826_v20 = vld [vmem:[#allocation2 + $0x8] sm:$0xff] }
 0x66c   : > { %v1776_v29 = vmul.f32 0.5, %v1775_v43  ;;  %v1754_v58 = vpop.xlane.xlu2 %1753 }
 0x66d   : > { %1835 = vst.msk [vmem:[#allocation2 + $0x10] sm:$0xff] %vm602_vm1, %v1831_v52  ;;  %v1810_v39 = vmul.f32 %v2339_v1, %v1803_v26  ;;  %v1758_v30 = vmul.f32 %v1754_v58, %v2912_v44 }
 0x66e   : > { %1839 = vst.msk [vmem:[#allocation13 + $0x10] sm:$0xff] %vm602_vm1, %v1831_v52  ;;  %v1777_v19 = vsub.f32 1.5, %v1776_v29 }
 0x66f   : > { %v1817_v3 = vadd.f32 %v2340_v37, %v1810_v39  ;;  %v1762_v36 = vadd.f32 1e-05, %v1758_v30 }
 0x670   : > { %v1778_v47 = vmul.f32 %v2412_v38, %v1777_v19 }
 0x671   : > { %v1821_v33 = vmax.f32 %v1817_v3, 0.0  ;;  %2413 = vrsqrt.f32 %v1762_v36  ;;  %vm1799_vm11 = vweird.f32 %v1762_v36 }
 0x672   : > { %v1782_v18 = vsel %vm1781_vm9, %v2412_v38, %v1778_v47 }
 0x673   : > { %v1829_v31 = vadd.f32 %v1825_v14, %v1821_v33  ;;  %v1804_v59 = vmul.f32 %v1782_v18, %v3279_v46 }
 0x675   : > { %1833 = vst.msk [vmem:[#allocation2] sm:$0xff] %vm602_vm1, %v1829_v31  ;;  %v1811_v5 = vmul.f32 %v2339_v1, %v1804_v59 }
 0x676   : > { %1837 = vst.msk [vmem:[#allocation13] sm:$0xff] %vm602_vm1, %v1829_v31 }
 0x677   : > { %v2414_v44 = vpop.eup %2413  ;;  %v1818_v17 = vadd.f32 %v2340_v37, %v1811_v5 }
 0x678   : > { %v1794_v53 = vmul.f32 %v2414_v44, %v1762_v36  ;;  %vm1800_vm10 = vweird.f32 %v2414_v44 }
 0x679   : > { %v1822_v16 = vmax.f32 %v1818_v17, 0.0  ;;  %vm1801_vm12 = vmor %vm1799_vm11, %vm1800_vm10 }
 0x67a   : > { %v1795_v15 = vmul.f32 %v2414_v44, %v1794_v53 }
 0x67b   : > { %v1830_v28 = vadd.f32 %v1826_v20, %v1822_v16 }
 0x67c   : > { %v1796_v40 = vmul.f32 0.5, %v1795_v15 }
 0x67d   : > { %1834 = vst.msk [vmem:[#allocation2 + $0x8] sm:$0xff] %vm602_vm1, %v1830_v28 }
 0x67e   : > { %1838 = vst.msk [vmem:[#allocation13 + $0x8] sm:$0xff] %vm602_vm1, %v1830_v28  ;;  %v1797_v42 = vsub.f32 1.5, %v1796_v40 }
 0x680   : > { %v1798_v46 = vmul.f32 %v2414_v44, %v1797_v42 }
 0x682   : > { %v1802_v25 = vsel %vm1801_vm12, %v2414_v44, %v1798_v46 }
 0x683   : > { %v1806_v48 = vmul.f32 %v1802_v25, %v3285_v62  ;;  %v1862_v62 = vld [vmem:[#allocation3 + $0x18] sm:$0xff] (%p1841_p1) }
 0x684   : > { %1863 = vst [vmem:[%s3386_s13 + $0x18] sm:$0xff] (%p1841_p1), %v1862_v62 }
 0x685   : > { %v1813_v49 = vmul.f32 %v2339_v1, %v1806_v48 }
 0x687   : > { %v1820_v24 = vadd.f32 %v2340_v37, %v1813_v49 }
 0x689   : > { %v1824_v27 = vmax.f32 %v1820_v24, 0.0 }
 0x68a   : > { %1845 = sbr.rel (!%p1841_p1) target bundleno = 1682 (0x692), region = 99 }
 0x68b   : > { %v1832_v4 = vadd.f32 %v1828_v55, %v1824_v27 }
 0x68d   : > { %1836 = vst.msk [vmem:[#allocation2 + $0x18] sm:$0xff] %vm602_vm1, %v1832_v4 }
 0x68e   : > { %1840 = vst.msk [vmem:[#allocation13 + $0x18] sm:$0xff] %vm602_vm1, %v1832_v4 }
 0x68f   : > { %1877 = vsyncadd [#allocation9], 1024 }
 0x690   : > { %2503 = dma.done.wait [#allocation9], 1024 }
 0x691   : > { %2504 = vsyncadd [#allocation9], 4294966272 }
 0x692 PF: > { %s3387_s21 = sadd.s32 4294967295, %s2531_s26   ;;  %s3388_s20 = sld [smem:[#allocation25_spill]] }
 0x693   : > { %p2237_p2 = scmp.eq.s32.totalorder %s3387_s21, 1  ;;  %s2539_s19 = smov [#allocation13]  }
 0x694   : > { %s1886_s18 = sshll.u32 %s2539_s19, 4  ;;  %s2540_s17 = smov 128   ;;  %s1887_s18 = int_to_ptr.vmem [resolvable:$true] %s1886_s18 }
 0x695   : > { %s2541_s24 = smov 8  }
 0x698   : > { %s1888_s23 = sshll.u32 %s3388_s20, 4  ;;  %s1889_s23 = int_to_ptr.hbm [resolvable:$true] %s1888_s23 }
 0x699   : > { %2229 = dma.vmem_to_hbm [thread:$0]  (%p2237_p2), %s1887_s18, 512, %s1889_s23, [#allocation12], %s2540_s17, %s2540_s17, %s2541_s24  }
 0x69a   : > { %2506 = dma.done.wait (%p2237_p2), [#allocation12], 512  }
 0x69b   : > { %2508 = vsyncadd (%p2237_p2), [#allocation12], 4294966784 }
 0x69c PF: > { %s27_s26 = sadd.s32 1, %s2531_s26   ;;  %s3389_s27 = sld [smem:[#allocation20_spill]] }
 0x69d   : > { %p24_p3 = scmp.ge.s32.totalorder %s27_s26, 4   ;;  %s3390_s23 = sld [smem:[#allocation23_spill]] }
 0x69e   : > { %s3391_s24 = sld [smem:[#allocation21_spill]]  ;;  %s3393_s21 = smov %s2515_s22 }
 0x69f   : > { %s3392_s25 = sld [smem:[#allocation22_spill]]  ;;  %26 = sbr.rel (!%p24_p3) target bundleno = 9 (0x9), region = 187 }
 0x6a2   : > { %s3394_s22 = smov %s3389_s27 }
 0x6a4   :  { %1905 = vsyncpa [#allocation11], 1 }
 0x6a5   :  { %1907 = vsyncpa [#allocation11 + $0x1], 1 }
 0x6a6   :  { %1908 = vsyncpa [#allocation12], 1 }
 0x6a7   :  { %1910 = vsyncpa [#allocation12 + $0x1], 1 }
 0x6a8   :  { %1911 = vsyncmov [#allocation9] }
 0x6ab   :  { %s1912_s12 = vpop.sfrf %1911 }
 0x6ac   :  { %p2197_p4 = scmp.ne.s32.totalorder %s1912_s12, 0 }
 0x6ae   :  { %1916 = shalt.err (%p2197_p4)  }

</bundles_post_ra>
